<compile_context>
chip_gen: v7x
topology: tpu7x:2x2x1
jax: 0.10.0
libtpu: 0.0.40
codegen_flags: <defaults>
</compile_context>

<pallas_src>
import functools

import jax
import jax.numpy as jnp
import numpy as np
from jax import lax
from jax.experimental import pallas as pl
from jax.experimental.pallas import tpu as pltpu

EPS = 1e-5


# ----------------------------------------------------------------------------
# Fused kernel: ConvTranspose2d(2,2) + F.pad + concat + (conv3x3+BN+ReLU) x 2
# ----------------------------------------------------------------------------
def _up_fused_kernel(x1_ref, x2p_ref, mask_ref,
                     wup_ref, bup_ref,
                     w1_ref, s1_ref, b1_ref,
                     w2_ref, s2_ref, b2_ref,
                     o_ref, *,
                     H1, W1, H2, W2, py0, px0, compute_dtype):
    Hp, Wp = H2 + 2, W2 + 2          # spatial domain incl. 1-px conv halo
    L = Hp * Wp                      # flattened padded domain (lane axis)
    S1 = H1 * W1
    half = x2p_ref.shape[1]
    SH = Wp + 1                      # largest |flat shift| of a 3x3 tap
    cdt = compute_dtype

    # ---- ConvTranspose2d(k=2, s=2) + F.pad placement, entirely as matmuls --
    # yd[(p, q, co), j=(y, x)] = sum_ci wup[(p,q,co), ci] * x1[ci, j]
    yd = jnp.dot(wup_ref[...], x1_ref[0], preferred_element_type=jnp.float32)
    yd = yd + bup_ref[...]           # deconv bias; reaches only the deconv
                                     # region because the scatter rows are 0/1
    # One-hot scatter matrices: P_pq[j, l] == 1 iff l is the flat position of
    # padded-domain pixel (1 + py0 + 2y + p, 1 + px0 + 2x + q).
    y_i = lax.broadcasted_iota(jnp.int32, (H1, W1, 1), 0)
    x_i = lax.broadcasted_iota(jnp.int32, (H1, W1, 1), 1)
    l_i = lax.broadcasted_iota(jnp.int32, (1, 1, L), 2)
    up = jnp.zeros((half, L), jnp.float32)       # register-resident accumulator
    for p in range(2):
        for q in range(2):
            tgt = (1 + py0 + 2 * y_i + p) * Wp + (1 + px0 + 2 * x_i + q)
            pmat = (l_i == tgt).astype(jnp.float32).reshape(S1, L)
            blk = p * 2 + q
            up = up + jnp.dot(yd[blk * half:(blk + 1) * half, :], pmat,
                              preferred_element_type=jnp.float32)

    # ---- channel concat: cat = [skip(x2) ; upsampled(x1)]  -> (Cin, L) ------
    cat = jnp.concatenate([x2p_ref[0], up], axis=0)

    # ---- fused 3x3 conv + folded BN + ReLU: one fat-K MXU matmul ------------
    def conv3x3_bn_relu(src, w_ref, s_ref, b_ref):
        cin = src.shape[0]
        ext = jnp.concatenate(
            [jnp.zeros((cin, SH), src.dtype), src,
             jnp.zeros((cin, SH), src.dtype)], axis=1)
        taps = []
        for dy in range(3):
            for dx in range(3):
                off = SH + (dy - 1) * Wp + (dx - 1)
                taps.append(ext[:, off:off + L])
        slab = jnp.concatenate(taps, axis=0).astype(cdt)       # (9*cin, L)
        z = jnp.dot(w_ref[...], slab, preferred_element_type=jnp.float32)
        return jnp.maximum(z * s_ref[...] + b_ref[...], 0.0)   # (Cout, L) f32

    # Masking conv1's halo ring makes y1 directly valid as conv2's
    # zero-padded input (no mid scratch, no halo re-zeroing).
    y1 = conv3x3_bn_relu(cat, w1_ref, s1_ref, b1_ref) * mask_ref[...]
    y2 = conv3x3_bn_relu(y1, w2_ref, s2_ref, b2_ref)
    o_ref[0] = y2.astype(o_ref.dtype)            # single lane-dense store


# ----------------------------------------------------------------------------
# Parameter setup / BN folding
# ----------------------------------------------------------------------------
def fold_bn(conv_b, gamma, beta, rmean, rvar):
    scale = gamma / jnp.sqrt(rvar + EPS)
    bias = (conv_b - rmean) * scale + beta
    return scale, bias


def init_params(key, in_ch, out_ch):
    ks = jax.random.split(key, 12)
    half = in_ch // 2
    return {
        # ConvTranspose2d(in_ch, in_ch//2, kernel=2, stride=2): (Cin, Co, 2, 2)
        "up_w": 0.1 * jax.random.normal(ks[0], (in_ch, half, 2, 2), jnp.float32),
        "up_b": 0.01 * jax.random.normal(ks[1], (half,), jnp.float32),
        # Conv1: in_ch -> out_ch
        "c1_w": 0.1 * jax.random.normal(ks[2], (out_ch, in_ch, 3, 3), jnp.float32),
        "c1_b": 0.01 * jax.random.normal(ks[3], (out_ch,), jnp.float32),
        "bn1_g": 1.0 + 0.1 * jax.random.normal(ks[4], (out_ch,), jnp.float32),
        "bn1_b": 0.1 * jax.random.normal(ks[5], (out_ch,), jnp.float32),
        "bn1_rm": 0.1 * jax.random.normal(ks[6], (out_ch,), jnp.float32),
        "bn1_rv": 1.0 + 0.1 * jnp.abs(jax.random.normal(ks[7], (out_ch,), jnp.float32)),
        # Conv2: out_ch -> out_ch
        "c2_w": 0.1 * jax.random.normal(ks[8], (out_ch, out_ch, 3, 3), jnp.float32),
        "c2_b": 0.01 * jax.random.normal(ks[9], (out_ch,), jnp.float32),
        "bn2_g": 1.0 + 0.1 * jax.random.normal(ks[10], (out_ch,), jnp.float32),
        "bn2_b": 0.1 * jax.random.normal(ks[11], (out_ch,), jnp.float32),
        "bn2_rm": jnp.zeros((out_ch,), jnp.float32),
        "bn2_rv": jnp.ones((out_ch,), jnp.float32),
    }


# ----------------------------------------------------------------------------
# Forward pass wrapper (NCHW in / NCHW out)
# ----------------------------------------------------------------------------
def up_forward(params, x1_nchw, x2_nchw, *, compute_dtype=jnp.float32,
               out_dtype=jnp.float32):
    """Equivalent of Up.forward(x1, x2); one fused Pallas kernel per image."""
    N, in_ch, H1, W1 = x1_nchw.shape
    half = in_ch // 2
    _, _, H2, W2 = x2_nchw.shape
    out_ch = params["c1_w"].shape[0]
    if H2 < 2 * H1 or W2 < 2 * W1:
        raise ValueError(
            f"Up kernel needs x2 spatial >= 2*x1 spatial, got {(H1, W1)} -> {(H2, W2)}")
    py0, px0 = (H2 - 2 * H1) // 2, (W2 - 2 * W1) // 2      # F.pad top/left
    Hp, Wp = H2 + 2, W2 + 2
    L = Hp * Wp
    cdt = jnp.dtype(compute_dtype)
    odt = jnp.dtype(out_dtype)

    # NCHW already matches the kernel's channel-major layout: only free
    # reshapes + a 1-px zero pad of the skip happen outside (no transposes,
    # no pixel-shuffle / concat / conv-activation HBM round trips).
    x1f = x1_nchw.reshape(N, in_ch, H1 * W1).astype(jnp.float32)
    x2p = jnp.pad(x2_nchw.astype(jnp.float32),
                  ((0, 0), (0, 0), (1, 1), (1, 1))).reshape(N, half, L)

    # Interior mask of the padded domain (1 inside H2xW2, 0 on the 1-px ring).
    m = np.zeros((Hp, Wp), np.float32)
    m[1:1 + H2, 1:1 + W2] = 1.0
    mask = jnp.asarray(m.reshape(1, L))

    # ConvTranspose2d weight (Cin, half, 2, 2) -> rows ordered (p, q, co).
    wup = jnp.transpose(params["up_w"], (2, 3, 1, 0)).reshape(4 * half, in_ch)
    wup = wup.astype(jnp.float32)
    bup = jnp.tile(params["up_b"], 4).reshape(4 * half, 1).astype(jnp.float32)

    # 3x3 convs as fat (Cout, 9*Cin) matrices (tap-major columns), BN folded.
    w1 = jnp.transpose(params["c1_w"], (0, 2, 3, 1)).reshape(out_ch, 9 * in_ch).astype(cdt)
    w2 = jnp.transpose(params["c2_w"], (0, 2, 3, 1)).reshape(out_ch, 9 * out_ch).astype(cdt)
    s1, b1 = fold_bn(params["c1_b"], params["bn1_g"], params["bn1_b"],
                     params["bn1_rm"], params["bn1_rv"])
    s2, b2 = fold_bn(params["c2_b"], params["bn2_g"], params["bn2_b"],
                     params["bn2_rm"], params["bn2_rv"])
    s1 = s1.reshape(out_ch, 1).astype(jnp.float32)
    b1 = b1.reshape(out_ch, 1).astype(jnp.float32)
    s2 = s2.reshape(out_ch, 1).astype(jnp.float32)
    b2 = b2.reshape(out_ch, 1).astype(jnp.float32)

    kernel = functools.partial(
        _up_fused_kernel, H1=H1, W1=W1, H2=H2, W2=W2, py0=py0, px0=px0,
        compute_dtype=cdt)

    flops = int(2 * N * (H1 * W1 * in_ch * 4 * half        # deconv matmul
                         + 4 * H1 * W1 * L * half          # one-hot scatter
                         + 9 * in_ch * L * out_ch          # conv1 (padded dom)
                         + 9 * out_ch * L * out_ch))       # conv2
    bytes_accessed = int(
        4 * (x1f.size + x2p.size + mask.size + wup.size + bup.size
             + s1.size + b1.size + s2.size + b2.size)
        + cdt.itemsize * (w1.size + w2.size)
        + odt.itemsize * N * out_ch * L)

    out_flat = pl.pallas_call(
        kernel,
        out_shape=jax.ShapeDtypeStruct((N, out_ch, L), odt),
        grid=(N,),
        in_specs=[
            pl.BlockSpec((1, in_ch, H1 * W1), lambda n: (n, 0, 0)),
            pl.BlockSpec((1, half, L), lambda n: (n, 0, 0)),
            pl.BlockSpec((1, L), lambda n: (0, 0)),
            pl.BlockSpec((4 * half, in_ch), lambda n: (0, 0)),
            pl.BlockSpec((4 * half, 1), lambda n: (0, 0)),
            pl.BlockSpec((out_ch, 9 * in_ch), lambda n: (0, 0)),
            pl.BlockSpec((out_ch, 1), lambda n: (0, 0)),
            pl.BlockSpec((out_ch, 1), lambda n: (0, 0)),
            pl.BlockSpec((out_ch, 9 * out_ch), lambda n: (0, 0)),
            pl.BlockSpec((out_ch, 1), lambda n: (0, 0)),
            pl.BlockSpec((out_ch, 1), lambda n: (0, 0)),
        ],
        out_specs=pl.BlockSpec((1, out_ch, L), lambda n: (n, 0, 0)),
        compiler_params=pltpu.CompilerParams(
            dimension_semantics=("parallel",),
            vmem_limit_bytes=8 * 1024 * 1024),
        cost_estimate=pl.CostEstimate(flops=flops, transcendentals=0,
                                      bytes_accessed=bytes_accessed),
    )(x1f, x2p, mask, wup, bup, w1, s1, b1, w2, s2, b2)

    # (N, Cout, Hp*Wp) -> NCHW interior: free reshape + one small HBM slice.
    return out_flat.reshape(N, out_ch, Hp, Wp)[:, :, 1:1 + H2, 1:1 + W2]


# ----------------------------------------------------------------------------
# Pure-JAX reference (NCHW, mirrors the PyTorch forward in eval mode)
# ----------------------------------------------------------------------------
def reference(params, x1, x2):
    t = jnp.einsum("nihw,iopq->nohpwq", x1, params["up_w"])
    N, Co, H, _, W, _ = t.shape
    u = t.reshape(N, Co, 2 * H, 2 * W) + params["up_b"][None, :, None, None]
    dy = x2.shape[2] - u.shape[2]
    dx = x2.shape[3] - u.shape[3]
    u = jnp.pad(u, ((0, 0), (0, 0),
                    (dy // 2, dy - dy // 2), (dx // 2, dx - dx // 2)))
    x = jnp.concatenate([x2, u], axis=1)

    def cbr(x, w, b, g, be, rm, rv):
        y = lax.conv_general_dilated(x, w, (1, 1), ((1, 1), (1, 1)),
                                     dimension_numbers=("NCHW", "OIHW", "NCHW"))
        y = y + b[None, :, None, None]
        y = (g[None, :, None, None] * (y - rm[None, :, None, None])
             / jnp.sqrt(rv[None, :, None, None] + EPS) + be[None, :, None, None])
        return jnp.maximum(y, 0.0)

    x = cbr(x, params["c1_w"], params["c1_b"], params["bn1_g"], params["bn1_b"],
            params["bn1_rm"], params["bn1_rv"])
    x = cbr(x, params["c2_w"], params["c2_b"], params["bn2_g"], params["bn2_b"],
            params["bn2_rm"], params["bn2_rv"])
    return x


if __name__ == "__main__":
    key = jax.random.PRNGKey(0)
    k_p, k_x1, k_x2, k_x2b = jax.random.split(key, 4)

    in_ch, out_ch = 8, 4
    N, H1, W1 = 2, 8, 8                     # x1 is the low-res feature map
    params = init_params(k_p, in_ch, out_ch)

    # --- case 1: skip exactly 2x the spatial size of x1 (no F.pad margin) ---
    x1 = jax.random.normal(k_x1, (N, in_ch, H1, W1), jnp.float32)
    x2 = jax.random.normal(k_x2, (N, in_ch // 2, 2 * H1, 2 * W1), jnp.float32)
    ref = reference(params, x1, x2)
    out = jax.block_until_ready(up_forward(params, x1, x2))
    assert out.shape == (N, out_ch, 2 * H1, 2 * W1), out.shape
    np.testing.assert_allclose(np.asarray(out), np.asarray(ref),
                               rtol=2e-4, atol=2e-4)

    # --- case 2: odd size mismatch exercising the asymmetric F.pad path -----
    x2b = jax.random.normal(k_x2b, (N, in_ch // 2, 2 * H1 + 3, 2 * W1 + 3),
                            jnp.float32)
    refb = reference(params, x1, x2b)
    outb = jax.block_until_ready(up_forward(params, x1, x2b))
    np.testing.assert_allclose(np.asarray(outb), np.asarray(refb),
                               rtol=2e-4, atol=2e-4)

    # --- bf16 MXU operands + bf16 output (f32 accumulation / f32 epilogue) --
    out_bf16 = jax.block_until_ready(
        up_forward(params, x1, x2, compute_dtype=jnp.bfloat16,
                   out_dtype=jnp.bfloat16))
    np.testing.assert_allclose(np.asarray(out_bf16.astype(jnp.float32)),
                               np.asarray(ref), rtol=1e-1, atol=1e-1)

    print("KERNEL_OK")
</pallas_src>

<mosaic_0001>
module attributes {stable_mosaic.version = 11 : i64} {
  func.func @_up_fused_kernel(%arg0: i32, %arg1: memref<1x8x64xf32, #tpu.memory_space<vmem>>, %arg2: memref<1x4x324xf32, #tpu.memory_space<vmem>>, %arg3: memref<1x324xf32, #tpu.memory_space<vmem>>, %arg4: memref<16x8xf32, #tpu.memory_space<vmem>>, %arg5: memref<16x1xf32, #tpu.memory_space<vmem>>, %arg6: memref<4x72xf32, #tpu.memory_space<vmem>>, %arg7: memref<4x1xf32, #tpu.memory_space<vmem>>, %arg8: memref<4x1xf32, #tpu.memory_space<vmem>>, %arg9: memref<4x36xf32, #tpu.memory_space<vmem>>, %arg10: memref<4x1xf32, #tpu.memory_space<vmem>>, %arg11: memref<4x1xf32, #tpu.memory_space<vmem>>, %arg12: memref<1x4x324xf32, #tpu.memory_space<vmem>>) attributes {dimension_semantics = [#tpu.dimension_semantics<parallel>], iteration_bounds = array<i64: 2>, scalar_prefetch = 0 : i64, scratch_operands = 0 : i64, tpu.core_type = #tpu.core_type<tc>, window_params = [{transform_indices = @transform_0, window_bounds = array<i64: 1, 8, 64>}, {transform_indices = @transform_1, window_bounds = array<i64: 1, 4, 324>}, {pipeline_mode = #tpu.pipeline_mode<synchronous>, transform_indices = @transform_2, window_bounds = array<i64: 1, 324>}, {pipeline_mode = #tpu.pipeline_mode<synchronous>, transform_indices = @transform_3, window_bounds = array<i64: 16, 8>}, {pipeline_mode = #tpu.pipeline_mode<synchronous>, transform_indices = @transform_4, window_bounds = array<i64: 16, 1>}, {pipeline_mode = #tpu.pipeline_mode<synchronous>, transform_indices = @transform_5, window_bounds = array<i64: 4, 72>}, {pipeline_mode = #tpu.pipeline_mode<synchronous>, transform_indices = @transform_6, window_bounds = array<i64: 4, 1>}, {pipeline_mode = #tpu.pipeline_mode<synchronous>, transform_indices = @transform_7, window_bounds = array<i64: 4, 1>}, {pipeline_mode = #tpu.pipeline_mode<synchronous>, transform_indices = @transform_8, window_bounds = array<i64: 4, 36>}, {pipeline_mode = #tpu.pipeline_mode<synchronous>, transform_indices = @transform_9, window_bounds = array<i64: 4, 1>}, {pipeline_mode = #tpu.pipeline_mode<synchronous>, transform_indices = @transform_10, window_bounds = array<i64: 4, 1>}, {transform_indices = @transform_11, window_bounds = array<i64: 1, 4, 324>}]} {
    %c0 = arith.constant 0 : index
    %c0_0 = arith.constant 0 : index
    %0 = vector.load %arg4[%c0, %c0_0] : memref<16x8xf32, #tpu.memory_space<vmem>>, vector<16x8xf32>
    %c0_1 = arith.constant 0 : index
    %c0_2 = arith.constant 0 : index
    %c0_3 = arith.constant 0 : index
    %1 = vector.load %arg1[%c0_1, %c0_2, %c0_3] : memref<1x8x64xf32, #tpu.memory_space<vmem>>, vector<1x8x64xf32>
    %2 = vector.shape_cast %1 : vector<1x8x64xf32> to vector<8x64xf32>
    %cst = arith.constant dense<0.000000e+00> : vector<16x64xf32>
    %3 = tpu.matmul %0, %2, %cst {dimension_numbers = #tpu.dot_dimension_numbers<[1], [0], [0], [1], [0, 0, 1, 1], [], []>} : vector<16x8xf32>, vector<8x64xf32>, vector<16x64xf32> -> vector<16x64xf32>
    %c0_4 = arith.constant 0 : index
    %c0_5 = arith.constant 0 : index
    %4 = vector.load %arg5[%c0_4, %c0_5] : memref<16x1xf32, #tpu.memory_space<vmem>>, vector<16x1xf32>
    %5 = vector.broadcast %4 : vector<16x1xf32> to vector<16x64xf32>
    %6 = arith.addf %3, %5 : vector<16x64xf32>
    %7 = tpu.iota {dimensions = array<i32: 0>} : vector<8x8x1xi32>
    %8 = tpu.iota {dimensions = array<i32: 1>} : vector<8x8x1xi32>
    %9 = tpu.iota {dimensions = array<i32: 2>} : vector<1x1x324xi32>
    %cst_6 = arith.constant 0.000000e+00 : f32
    %10 = vector.broadcast %cst_6 : f32 to vector<4x324xf32>
    %c2_i32 = arith.constant 2 : i32
    %11 = vector.broadcast %c2_i32 : i32 to vector<8x8x1xi32>
    %12 = arith.muli %11, %7 : vector<8x8x1xi32>
    %c1_i32 = arith.constant 1 : i32
    %13 = vector.broadcast %c1_i32 : i32 to vector<8x8x1xi32>
    %14 = arith.addi %13, %12 : vector<8x8x1xi32>
    %c0_i32 = arith.constant 0 : i32
    %15 = vector.broadcast %c0_i32 : i32 to vector<8x8x1xi32>
    %16 = arith.addi %14, %15 : vector<8x8x1xi32>
    %c18_i32 = arith.constant 18 : i32
    %17 = vector.broadcast %c18_i32 : i32 to vector<8x8x1xi32>
    %18 = arith.muli %16, %17 : vector<8x8x1xi32>
    %c2_i32_7 = arith.constant 2 : i32
    %19 = vector.broadcast %c2_i32_7 : i32 to vector<8x8x1xi32>
    %20 = arith.muli %19, %8 : vector<8x8x1xi32>
    %c1_i32_8 = arith.constant 1 : i32
    %21 = vector.broadcast %c1_i32_8 : i32 to vector<8x8x1xi32>
    %22 = arith.addi %21, %20 : vector<8x8x1xi32>
    %c0_i32_9 = arith.constant 0 : i32
    %23 = vector.broadcast %c0_i32_9 : i32 to vector<8x8x1xi32>
    %24 = arith.addi %22, %23 : vector<8x8x1xi32>
    %25 = arith.addi %18, %24 : vector<8x8x1xi32>
    %26 = vector.broadcast %9 : vector<1x1x324xi32> to vector<8x8x324xi32>
    %27 = vector.broadcast %25 : vector<8x8x1xi32> to vector<8x8x324xi32>
    %28 = arith.cmpi eq, %26, %27 : vector<8x8x324xi32>
    %29 = arith.extui %28 : vector<8x8x324xi1> to vector<8x8x324xi32>
    %30 = arith.sitofp %29 : vector<8x8x324xi32> to vector<8x8x324xf32>
    %31 = vector.shape_cast %30 : vector<8x8x324xf32> to vector<64x324xf32>
    %32 = vector.extract_strided_slice %6 {offsets = [0, 0], sizes = [4, 64], strides = [1, 1]} : vector<16x64xf32> to vector<4x64xf32>
    %cst_10 = arith.constant dense<0.000000e+00> : vector<4x324xf32>
    %33 = tpu.matmul %32, %31, %cst_10 {dimension_numbers = #tpu.dot_dimension_numbers<[1], [0], [0], [1], [0, 0, 1, 1], [], []>} : vector<4x64xf32>, vector<64x324xf32>, vector<4x324xf32> -> vector<4x324xf32>
    %34 = arith.addf %10, %33 : vector<4x324xf32>
    %c2_i32_11 = arith.constant 2 : i32
    %35 = vector.broadcast %c2_i32_11 : i32 to vector<8x8x1xi32>
    %36 = arith.muli %35, %7 : vector<8x8x1xi32>
    %c1_i32_12 = arith.constant 1 : i32
    %37 = vector.broadcast %c1_i32_12 : i32 to vector<8x8x1xi32>
    %38 = arith.addi %37, %36 : vector<8x8x1xi32>
    %c0_i32_13 = arith.constant 0 : i32
    %39 = vector.broadcast %c0_i32_13 : i32 to vector<8x8x1xi32>
    %40 = arith.addi %38, %39 : vector<8x8x1xi32>
    %c18_i32_14 = arith.constant 18 : i32
    %41 = vector.broadcast %c18_i32_14 : i32 to vector<8x8x1xi32>
    %42 = arith.muli %40, %41 : vector<8x8x1xi32>
    %c2_i32_15 = arith.constant 2 : i32
    %43 = vector.broadcast %c2_i32_15 : i32 to vector<8x8x1xi32>
    %44 = arith.muli %43, %8 : vector<8x8x1xi32>
    %c1_i32_16 = arith.constant 1 : i32
    %45 = vector.broadcast %c1_i32_16 : i32 to vector<8x8x1xi32>
    %46 = arith.addi %45, %44 : vector<8x8x1xi32>
    %c1_i32_17 = arith.constant 1 : i32
    %47 = vector.broadcast %c1_i32_17 : i32 to vector<8x8x1xi32>
    %48 = arith.addi %46, %47 : vector<8x8x1xi32>
    %49 = arith.addi %42, %48 : vector<8x8x1xi32>
    %50 = vector.broadcast %9 : vector<1x1x324xi32> to vector<8x8x324xi32>
    %51 = vector.broadcast %49 : vector<8x8x1xi32> to vector<8x8x324xi32>
    %52 = arith.cmpi eq, %50, %51 : vector<8x8x324xi32>
    %53 = arith.extui %52 : vector<8x8x324xi1> to vector<8x8x324xi32>
    %54 = arith.sitofp %53 : vector<8x8x324xi32> to vector<8x8x324xf32>
    %55 = vector.shape_cast %54 : vector<8x8x324xf32> to vector<64x324xf32>
    %56 = vector.extract_strided_slice %6 {offsets = [4, 0], sizes = [4, 64], strides = [1, 1]} : vector<16x64xf32> to vector<4x64xf32>
    %cst_18 = arith.constant dense<0.000000e+00> : vector<4x324xf32>
    %57 = tpu.matmul %56, %55, %cst_18 {dimension_numbers = #tpu.dot_dimension_numbers<[1], [0], [0], [1], [0, 0, 1, 1], [], []>} : vector<4x64xf32>, vector<64x324xf32>, vector<4x324xf32> -> vector<4x324xf32>
    %58 = arith.addf %34, %57 : vector<4x324xf32>
    %c2_i32_19 = arith.constant 2 : i32
    %59 = vector.broadcast %c2_i32_19 : i32 to vector<8x8x1xi32>
    %60 = arith.muli %59, %7 : vector<8x8x1xi32>
    %c1_i32_20 = arith.constant 1 : i32
    %61 = vector.broadcast %c1_i32_20 : i32 to vector<8x8x1xi32>
    %62 = arith.addi %61, %60 : vector<8x8x1xi32>
    %c1_i32_21 = arith.constant 1 : i32
    %63 = vector.broadcast %c1_i32_21 : i32 to vector<8x8x1xi32>
    %64 = arith.addi %62, %63 : vector<8x8x1xi32>
    %c18_i32_22 = arith.constant 18 : i32
    %65 = vector.broadcast %c18_i32_22 : i32 to vector<8x8x1xi32>
    %66 = arith.muli %64, %65 : vector<8x8x1xi32>
    %c2_i32_23 = arith.constant 2 : i32
    %67 = vector.broadcast %c2_i32_23 : i32 to vector<8x8x1xi32>
    %68 = arith.muli %67, %8 : vector<8x8x1xi32>
    %c1_i32_24 = arith.constant 1 : i32
    %69 = vector.broadcast %c1_i32_24 : i32 to vector<8x8x1xi32>
    %70 = arith.addi %69, %68 : vector<8x8x1xi32>
    %c0_i32_25 = arith.constant 0 : i32
    %71 = vector.broadcast %c0_i32_25 : i32 to vector<8x8x1xi32>
    %72 = arith.addi %70, %71 : vector<8x8x1xi32>
    %73 = arith.addi %66, %72 : vector<8x8x1xi32>
    %74 = vector.broadcast %9 : vector<1x1x324xi32> to vector<8x8x324xi32>
    %75 = vector.broadcast %73 : vector<8x8x1xi32> to vector<8x8x324xi32>
    %76 = arith.cmpi eq, %74, %75 : vector<8x8x324xi32>
    %77 = arith.extui %76 : vector<8x8x324xi1> to vector<8x8x324xi32>
    %78 = arith.sitofp %77 : vector<8x8x324xi32> to vector<8x8x324xf32>
    %79 = vector.shape_cast %78 : vector<8x8x324xf32> to vector<64x324xf32>
    %80 = vector.extract_strided_slice %6 {offsets = [8, 0], sizes = [4, 64], strides = [1, 1]} : vector<16x64xf32> to vector<4x64xf32>
    %cst_26 = arith.constant dense<0.000000e+00> : vector<4x324xf32>
    %81 = tpu.matmul %80, %79, %cst_26 {dimension_numbers = #tpu.dot_dimension_numbers<[1], [0], [0], [1], [0, 0, 1, 1], [], []>} : vector<4x64xf32>, vector<64x324xf32>, vector<4x324xf32> -> vector<4x324xf32>
    %82 = arith.addf %58, %81 : vector<4x324xf32>
    %c2_i32_27 = arith.constant 2 : i32
    %83 = vector.broadcast %c2_i32_27 : i32 to vector<8x8x1xi32>
    %84 = arith.muli %83, %7 : vector<8x8x1xi32>
    %c1_i32_28 = arith.constant 1 : i32
    %85 = vector.broadcast %c1_i32_28 : i32 to vector<8x8x1xi32>
    %86 = arith.addi %85, %84 : vector<8x8x1xi32>
    %c1_i32_29 = arith.constant 1 : i32
    %87 = vector.broadcast %c1_i32_29 : i32 to vector<8x8x1xi32>
    %88 = arith.addi %86, %87 : vector<8x8x1xi32>
    %c18_i32_30 = arith.constant 18 : i32
    %89 = vector.broadcast %c18_i32_30 : i32 to vector<8x8x1xi32>
    %90 = arith.muli %88, %89 : vector<8x8x1xi32>
    %c2_i32_31 = arith.constant 2 : i32
    %91 = vector.broadcast %c2_i32_31 : i32 to vector<8x8x1xi32>
    %92 = arith.muli %91, %8 : vector<8x8x1xi32>
    %c1_i32_32 = arith.constant 1 : i32
    %93 = vector.broadcast %c1_i32_32 : i32 to vector<8x8x1xi32>
    %94 = arith.addi %93, %92 : vector<8x8x1xi32>
    %c1_i32_33 = arith.constant 1 : i32
    %95 = vector.broadcast %c1_i32_33 : i32 to vector<8x8x1xi32>
    %96 = arith.addi %94, %95 : vector<8x8x1xi32>
    %97 = arith.addi %90, %96 : vector<8x8x1xi32>
    %98 = vector.broadcast %9 : vector<1x1x324xi32> to vector<8x8x324xi32>
    %99 = vector.broadcast %97 : vector<8x8x1xi32> to vector<8x8x324xi32>
    %100 = arith.cmpi eq, %98, %99 : vector<8x8x324xi32>
    %101 = arith.extui %100 : vector<8x8x324xi1> to vector<8x8x324xi32>
    %102 = arith.sitofp %101 : vector<8x8x324xi32> to vector<8x8x324xf32>
    %103 = vector.shape_cast %102 : vector<8x8x324xf32> to vector<64x324xf32>
    %104 = vector.extract_strided_slice %6 {offsets = [12, 0], sizes = [4, 64], strides = [1, 1]} : vector<16x64xf32> to vector<4x64xf32>
    %cst_34 = arith.constant dense<0.000000e+00> : vector<4x324xf32>
    %105 = tpu.matmul %104, %103, %cst_34 {dimension_numbers = #tpu.dot_dimension_numbers<[1], [0], [0], [1], [0, 0, 1, 1], [], []>} : vector<4x64xf32>, vector<64x324xf32>, vector<4x324xf32> -> vector<4x324xf32>
    %106 = arith.addf %82, %105 : vector<4x324xf32>
    %c0_35 = arith.constant 0 : index
    %c0_36 = arith.constant 0 : index
    %c0_37 = arith.constant 0 : index
    %107 = vector.load %arg2[%c0_35, %c0_36, %c0_37] : memref<1x4x324xf32, #tpu.memory_space<vmem>>, vector<1x4x324xf32>
    %108 = vector.shape_cast %107 : vector<1x4x324xf32> to vector<4x324xf32>
    %109 = tpu.concatenate %108, %106 in 0 : vector<4x324xf32>, vector<4x324xf32> -> vector<8x324xf32>
    %cst_38 = arith.constant 0.000000e+00 : f32
    %110 = vector.broadcast %cst_38 : f32 to vector<8x19xf32>
    %cst_39 = arith.constant 0.000000e+00 : f32
    %111 = vector.broadcast %cst_39 : f32 to vector<8x19xf32>
    %112 = tpu.concatenate %110, %109, %111 in 1 : vector<8x19xf32>, vector<8x324xf32>, vector<8x19xf32> -> vector<8x362xf32>
    %113 = vector.extract_strided_slice %112 {offsets = [0, 0], sizes = [8, 324], strides = [1, 1]} : vector<8x362xf32> to vector<8x324xf32>
    %114 = vector.extract_strided_slice %112 {offsets = [0, 1], sizes = [8, 324], strides = [1, 1]} : vector<8x362xf32> to vector<8x324xf32>
    %115 = vector.extract_strided_slice %112 {offsets = [0, 2], sizes = [8, 324], strides = [1, 1]} : vector<8x362xf32> to vector<8x324xf32>
    %116 = vector.extract_strided_slice %112 {offsets = [0, 18], sizes = [8, 324], strides = [1, 1]} : vector<8x362xf32> to vector<8x324xf32>
    %117 = vector.extract_strided_slice %112 {offsets = [0, 19], sizes = [8, 324], strides = [1, 1]} : vector<8x362xf32> to vector<8x324xf32>
    %118 = vector.extract_strided_slice %112 {offsets = [0, 20], sizes = [8, 324], strides = [1, 1]} : vector<8x362xf32> to vector<8x324xf32>
    %119 = vector.extract_strided_slice %112 {offsets = [0, 36], sizes = [8, 324], strides = [1, 1]} : vector<8x362xf32> to vector<8x324xf32>
    %120 = vector.extract_strided_slice %112 {offsets = [0, 37], sizes = [8, 324], strides = [1, 1]} : vector<8x362xf32> to vector<8x324xf32>
    %121 = vector.extract_strided_slice %112 {offsets = [0, 38], sizes = [8, 324], strides = [1, 1]} : vector<8x362xf32> to vector<8x324xf32>
    %122 = tpu.concatenate %113, %114, %115, %116, %117, %118, %119, %120, %121 in 0 : vector<8x324xf32>, vector<8x324xf32>, vector<8x324xf32>, vector<8x324xf32>, vector<8x324xf32>, vector<8x324xf32>, vector<8x324xf32>, vector<8x324xf32>, vector<8x324xf32> -> vector<72x324xf32>
    %c0_40 = arith.constant 0 : index
    %c0_41 = arith.constant 0 : index
    %123 = vector.load %arg6[%c0_40, %c0_41] : memref<4x72xf32, #tpu.memory_space<vmem>>, vector<4x72xf32>
    %cst_42 = arith.constant dense<0.000000e+00> : vector<4x324xf32>
    %124 = tpu.matmul %123, %122, %cst_42 {dimension_numbers = #tpu.dot_dimension_numbers<[1], [0], [0], [1], [0, 0, 1, 1], [], []>} : vector<4x72xf32>, vector<72x324xf32>, vector<4x324xf32> -> vector<4x324xf32>
    %c0_43 = arith.constant 0 : index
    %c0_44 = arith.constant 0 : index
    %125 = vector.load %arg7[%c0_43, %c0_44] : memref<4x1xf32, #tpu.memory_space<vmem>>, vector<4x1xf32>
    %126 = vector.broadcast %125 : vector<4x1xf32> to vector<4x324xf32>
    %127 = arith.mulf %124, %126 : vector<4x324xf32>
    %c0_45 = arith.constant 0 : index
    %c0_46 = arith.constant 0 : index
    %128 = vector.load %arg8[%c0_45, %c0_46] : memref<4x1xf32, #tpu.memory_space<vmem>>, vector<4x1xf32>
    %129 = vector.broadcast %128 : vector<4x1xf32> to vector<4x324xf32>
    %130 = arith.addf %127, %129 : vector<4x324xf32>
    %cst_47 = arith.constant 0.000000e+00 : f32
    %131 = vector.broadcast %cst_47 : f32 to vector<4x324xf32>
    %132 = arith.maximumf %130, %131 : vector<4x324xf32>
    %c0_48 = arith.constant 0 : index
    %c0_49 = arith.constant 0 : index
    %133 = vector.load %arg3[%c0_48, %c0_49] : memref<1x324xf32, #tpu.memory_space<vmem>>, vector<1x324xf32>
    %134 = vector.broadcast %133 : vector<1x324xf32> to vector<4x324xf32>
    %135 = arith.mulf %132, %134 : vector<4x324xf32>
    %cst_50 = arith.constant 0.000000e+00 : f32
    %136 = vector.broadcast %cst_50 : f32 to vector<4x19xf32>
    %cst_51 = arith.constant 0.000000e+00 : f32
    %137 = vector.broadcast %cst_51 : f32 to vector<4x19xf32>
    %138 = tpu.concatenate %136, %135, %137 in 1 : vector<4x19xf32>, vector<4x324xf32>, vector<4x19xf32> -> vector<4x362xf32>
    %139 = vector.extract_strided_slice %138 {offsets = [0, 0], sizes = [4, 324], strides = [1, 1]} : vector<4x362xf32> to vector<4x324xf32>
    %140 = vector.extract_strided_slice %138 {offsets = [0, 1], sizes = [4, 324], strides = [1, 1]} : vector<4x362xf32> to vector<4x324xf32>
    %141 = vector.extract_strided_slice %138 {offsets = [0, 2], sizes = [4, 324], strides = [1, 1]} : vector<4x362xf32> to vector<4x324xf32>
    %142 = vector.extract_strided_slice %138 {offsets = [0, 18], sizes = [4, 324], strides = [1, 1]} : vector<4x362xf32> to vector<4x324xf32>
    %143 = vector.extract_strided_slice %138 {offsets = [0, 19], sizes = [4, 324], strides = [1, 1]} : vector<4x362xf32> to vector<4x324xf32>
    %144 = vector.extract_strided_slice %138 {offsets = [0, 20], sizes = [4, 324], strides = [1, 1]} : vector<4x362xf32> to vector<4x324xf32>
    %145 = vector.extract_strided_slice %138 {offsets = [0, 36], sizes = [4, 324], strides = [1, 1]} : vector<4x362xf32> to vector<4x324xf32>
    %146 = vector.extract_strided_slice %138 {offsets = [0, 37], sizes = [4, 324], strides = [1, 1]} : vector<4x362xf32> to vector<4x324xf32>
    %147 = vector.extract_strided_slice %138 {offsets = [0, 38], sizes = [4, 324], strides = [1, 1]} : vector<4x362xf32> to vector<4x324xf32>
    %148 = tpu.concatenate %139, %140, %141, %142, %143, %144, %145, %146, %147 in 0 : vector<4x324xf32>, vector<4x324xf32>, vector<4x324xf32>, vector<4x324xf32>, vector<4x324xf32>, vector<4x324xf32>, vector<4x324xf32>, vector<4x324xf32>, vector<4x324xf32> -> vector<36x324xf32>
    %c0_52 = arith.constant 0 : index
    %c0_53 = arith.constant 0 : index
    %149 = vector.load %arg9[%c0_52, %c0_53] : memref<4x36xf32, #tpu.memory_space<vmem>>, vector<4x36xf32>
    %cst_54 = arith.constant dense<0.000000e+00> : vector<4x324xf32>
    %150 = tpu.matmul %149, %148, %cst_54 {dimension_numbers = #tpu.dot_dimension_numbers<[1], [0], [0], [1], [0, 0, 1, 1], [], []>} : vector<4x36xf32>, vector<36x324xf32>, vector<4x324xf32> -> vector<4x324xf32>
    %c0_55 = arith.constant 0 : index
    %c0_56 = arith.constant 0 : index
    %151 = vector.load %arg10[%c0_55, %c0_56] : memref<4x1xf32, #tpu.memory_space<vmem>>, vector<4x1xf32>
    %152 = vector.broadcast %151 : vector<4x1xf32> to vector<4x324xf32>
    %153 = arith.mulf %150, %152 : vector<4x324xf32>
    %c0_57 = arith.constant 0 : index
    %c0_58 = arith.constant 0 : index
    %154 = vector.load %arg11[%c0_57, %c0_58] : memref<4x1xf32, #tpu.memory_space<vmem>>, vector<4x1xf32>
    %155 = vector.broadcast %154 : vector<4x1xf32> to vector<4x324xf32>
    %156 = arith.addf %153, %155 : vector<4x324xf32>
    %cst_59 = arith.constant 0.000000e+00 : f32
    %157 = vector.broadcast %cst_59 : f32 to vector<4x324xf32>
    %158 = arith.maximumf %156, %157 : vector<4x324xf32>
    %c0_60 = arith.constant 0 : index
    %c0_61 = arith.constant 0 : index
    %c0_62 = arith.constant 0 : index
    %159 = vector.load %arg12[%c0_60, %c0_61, %c0_62] : memref<1x4x324xf32, #tpu.memory_space<vmem>>, vector<1x4x324xf32>
    %160 = vector.shape_cast %159 : vector<1x4x324xf32> to vector<4x324xf32>
    %161 = vector.shape_cast %158 : vector<4x324xf32> to vector<1x4x324xf32>
    tpu.vector_store %arg12[%c0_60, %c0_61, %c0_62], %161 {strides = array<i32>} : memref<1x4x324xf32, #tpu.memory_space<vmem>>, vector<1x4x324xf32>,
    return
  }
  func.func @transform_0(%arg0: i32) -> (i32, i32, i32) {
    %c0_i32 = arith.constant 0 : i32
    %c0_i32_0 = arith.constant 0 : i32
    %c0_i32_1 = arith.constant 0 : i32
    return %arg0, %c0_i32, %c0_i32_0 : i32, i32, i32
  }
  func.func @transform_1(%arg0: i32) -> (i32, i32, i32) {
    %c0_i32 = arith.constant 0 : i32
    %c0_i32_0 = arith.constant 0 : i32
    %c0_i32_1 = arith.constant 0 : i32
    return %arg0, %c0_i32, %c0_i32_0 : i32, i32, i32
  }
  func.func @transform_2(%arg0: i32) -> (i32, i32) {
    %c0_i32 = arith.constant 0 : i32
    %c0_i32_0 = arith.constant 0 : i32
    %c0_i32_1 = arith.constant 0 : i32
    return %c0_i32, %c0_i32_0 : i32, i32
  }
  func.func @transform_3(%arg0: i32) -> (i32, i32) {
    %c0_i32 = arith.constant 0 : i32
    %c0_i32_0 = arith.constant 0 : i32
    %c0_i32_1 = arith.constant 0 : i32
    return %c0_i32, %c0_i32_0 : i32, i32
  }
  func.func @transform_4(%arg0: i32) -> (i32, i32) {
    %c0_i32 = arith.constant 0 : i32
    %c0_i32_0 = arith.constant 0 : i32
    %c0_i32_1 = arith.constant 0 : i32
    return %c0_i32, %c0_i32_0 : i32, i32
  }
  func.func @transform_5(%arg0: i32) -> (i32, i32) {
    %c0_i32 = arith.constant 0 : i32
    %c0_i32_0 = arith.constant 0 : i32
    %c0_i32_1 = arith.constant 0 : i32
    return %c0_i32, %c0_i32_0 : i32, i32
  }
  func.func @transform_6(%arg0: i32) -> (i32, i32) {
    %c0_i32 = arith.constant 0 : i32
    %c0_i32_0 = arith.constant 0 : i32
    %c0_i32_1 = arith.constant 0 : i32
    return %c0_i32, %c0_i32_0 : i32, i32
  }
  func.func @transform_7(%arg0: i32) -> (i32, i32) {
    %c0_i32 = arith.constant 0 : i32
    %c0_i32_0 = arith.constant 0 : i32
    %c0_i32_1 = arith.constant 0 : i32
    return %c0_i32, %c0_i32_0 : i32, i32
  }
  func.func @transform_8(%arg0: i32) -> (i32, i32) {
    %c0_i32 = arith.constant 0 : i32
    %c0_i32_0 = arith.constant 0 : i32
    %c0_i32_1 = arith.constant 0 : i32
    return %c0_i32, %c0_i32_0 : i32, i32
  }
  func.func @transform_9(%arg0: i32) -> (i32, i32) {
    %c0_i32 = arith.constant 0 : i32
    %c0_i32_0 = arith.constant 0 : i32
    %c0_i32_1 = arith.constant 0 : i32
    return %c0_i32, %c0_i32_0 : i32, i32
  }
  func.func @transform_10(%arg0: i32) -> (i32, i32) {
    %c0_i32 = arith.constant 0 : i32
    %c0_i32_0 = arith.constant 0 : i32
    %c0_i32_1 = arith.constant 0 : i32
    return %c0_i32, %c0_i32_0 : i32, i32
  }
  func.func @transform_11(%arg0: i32) -> (i32, i32, i32) {
    %c0_i32 = arith.constant 0 : i32
    %c0_i32_0 = arith.constant 0 : i32
    %c0_i32_1 = arith.constant 0 : i32
    return %arg0, %c0_i32, %c0_i32_0 : i32, i32, i32
  }
}

</mosaic_0001>

<bundles_post_ra>
// kernel: tpu_custom_call.1
= control target key start
LH: loop header
LB: loop body
LE: loop exit
PB: predicated region body
PF: predicated region fallthrough
CT: control target
= control target key end

     0   :  { %s3466_s0 = inlined_call_operand.vmem [shape: f32[2,8,64], index: 0, kind: input, shape index: {}]   ;;  %s3467_s1 = inlined_call_operand.vmem [shape: f32[2,4,324], index: 1, kind: input, shape index: {}]   ;;  %s3468_s2 = inlined_call_operand.vmem [shape: f32[1,324], index: 2, kind: input, shape index: {}]   ;;  %s3469_s3 = inlined_call_operand.vmem [shape: f32[16,8], index: 3, kind: input, shape index: {}]   ;;  %s3470_s4 = inlined_call_operand.vmem [shape: f32[16,1], index: 4, kind: input, shape index: {}]   ;;  %s3471_s5 = inlined_call_operand.vmem [shape: f32[4,72], index: 5, kind: input, shape index: {}]   ;;  %s3472_s6 = inlined_call_operand.vmem [shape: f32[4,1], index: 6, kind: input, shape index: {}]   ;;  %s3473_s7 = inlined_call_operand.vmem [shape: f32[4,1], index: 7, kind: input, shape index: {}]   ;;  %s3474_s8 = inlined_call_operand.vmem [shape: f32[4,36], index: 8, kind: input, shape index: {}]   ;;  %s3475_s9 = inlined_call_operand.vmem [shape: f32[4,1], index: 9, kind: input, shape index: {}]   ;;  %s3476_s10 = inlined_call_operand.vmem [shape: f32[4,1], index: 10, kind: input, shape index: {}]   ;;  %s3477_s11 = inlined_call_operand.hbm [shape: f32[2,4,324], index: 11, kind: output, shape index: {}]  }
   0x1   :  { %3487 = sst [smem:[#allocation5_spill]] %s3466_s0 }
   0x2   :  { %16 = vsyncpa [#allocation3], 0 }
   0x3   :  { %18 = vsyncpa [#allocation3 + $0x1], 0  ;;  %s2945_s17 = smov 0   ;;  %s2947_s18 = smov 0  }
   0x4   :  { %s2949_s19 = smov 0   ;;  %s2951_s20 = smov 0  }
   0x5 LB: > { %s2966_s21 = sadd.s32 4294967295, %s2867_s20   ;;  %s2116_s22 = sadd.s32 4294967294, %s2867_s20   ;;  %s2867_s20 = sphi %s2951_s20, %s3513_s20   ;;  %s2863_s19 = sphi %s2949_s19, %s3512_s19   ;;  %s2859_s18 = sphi %s2947_s18, %s3511_s18   ;;  %s2855_s17 = sphi %s2945_s17, %s3510_s17  }
   0x6   : > { %s2970_s23 = sadd.s32 1, %s2867_s20   ;;  %s272_s24 = sadd.s32 1, %s2863_s19 }
   0x7   : > { %s269_s25 = ssub.s32 %s2867_s20, %s2970_s23  ;;  %p282_p0 = scmp.ne.s32.totalorder %s2863_s19, %s2859_s18 }
   0x8   : > { %p270_p1 = scmp.eq.s32.totalorder %s269_s25, 0  ;;  %p283_p2 = scmp.eq.s32.totalorder %s2966_s21, 1 }
   0x9   : > { %p288_p3 = scmp.ne.s32.totalorder %s2859_s18, %s2855_s17  ;;  %p289_p4 = scmp.eq.s32.totalorder %s2116_s22, 1 }
   0xa   : > { %s2981_s26 = scalar_select %p270_p1, %s2863_s19, %s272_s24  }
   0xb   : > { %p2983_p5 = por %p283_p2, %p282_p0  ;;  %p2987_p6 = por %p289_p4, %p288_p3 }
   0xc   : > { %p2119_p7 = scmp.ge.s32.totalorder %s2867_s20, 1  ;;  %p349_p8 = scmp.lt.s32.totalorder %s2867_s20, 3 }
   0xe   : > { %p350_p9 = pnand %p2119_p7, %p349_p8 }
   0xf   : > { %p393_p10 = scmp.lt.s32.totalorder (!%p350_p9), %s2966_s21, 1  ;;  %v402_v0 = vld [vmem:[%s3469_s3] sm:$0xff] (!%p350_p9)  ;;  %vm417_vm0 = vcmask (!%p350_p9), 64512   ;;  %v499_v2 = vlaneseq (!%p350_p9)  ;;  %v2869_v3 = vmov (!%p350_p9), 0   ;;  %v406_v5 = vld [vmem:[%s3470_s4 + $0x8] sm:$0xff] (!%p350_p9)  ;;  %s3490_s0 = sld [smem:[#allocation5_spill]] (!%p350_p9) }
  0x10   : > { %353 = sbr.rel (%p350_p9) target bundleno = 1503 (0x5df), region = 64  ;;  %v405_v1 = vld [vmem:[%s3470_s4] sm:$0xff] (!%p350_p9)  ;;  %2394 = vmatprep.mubr.msk.f32.mxu0 (!%p350_p9), %vm417_vm0, %v402_v0  ;;  %2732 = vset.pattern.permute.xlu0 (!%p350_p9), %v2869_v3  ;;  %v403_v9 = vld [vmem:[%s3469_s3 + $0x8] sm:$0xff] (!%p350_p9)  ;;  %v2870_v13 = vmov (!%p350_p9), 0.0|0.0   ;;  %v2871_v21 = vmov (!%p350_p9), 1.0|1.0  }
  0x11   : > { %409 = vperm.xlu0 (!%p350_p9), %2732, %v405_v1   ;;  %v3004_v4 = vshrl.u32 (!%p350_p9), %v499_v2, 7  ;;  %2768 = vset.pattern.permute.xlu1 (!%p350_p9), %v2869_v3  ;;  %v3010_v6 = vand.u32 (!%p350_p9), 127, %v499_v2  ;;  %v2872_v26 = vmov (!%p350_p9), 0.0   ;;  %s3485_s24 = smov (!%p350_p9), 127   ;;  %s2876_s25 = smov (!%p350_p9), 126  }
  0x12   : > { %737 = vmatprep.mubr.f32.mxu1 (!%p350_p9), %v2872_v26  ;;  %s2878_s30 = smov (!%p350_p9), 109   ;;  %s3483_s12 = smov (!%p350_p9), 108  }
  0x13   : > { %v505_v7 = vmul.u32 (!%p350_p9), 2, %v3004_v4  ;;  %v3022_v11 = vadd.s32 (!%p350_p9), 128, %v3010_v6  ;;  %v3030_v14 = vadd.s32 (!%p350_p9), 256, %v3010_v6  ;;  %s2881_s15 = smov (!%p350_p9), 91   ;;  %s2882_s16 = smov (!%p350_p9), 90  }
  0x15   : > { %414 = vperm.xlu0 (!%p350_p9), %2732, %v406_v5   ;;  %v3019_v10 = vadd.s32 (!%p350_p9), 1, %v505_v7 }
  0x17   : > { %s3002_s14 = scalar_select %p393_p10, %s2966_s21, 1  ;;  %v3025_v12 = vadd.s32 1, %v3019_v10  ;;  %v507_v24 = vadd.s32 18, %v3019_v10  ;;  %v508_v25 = vadd.s32 54, %v3019_v10  ;;  %v509_v29 = vadd.s32 90, %v3019_v10 }
  0x18   : > { %v510_v30 = vadd.s32 126, %v3019_v10  ;;  %v511_v35 = vadd.s32 162, %v3019_v10  ;;  %v512_v36 = vadd.s32 198, %v3019_v10  ;;  %v513_v38 = vadd.s32 234, %v3019_v10 }
  0x19   : > { %s2120_s22 = sshll.u32 %s3002_s14, 3  ;;  %v588_v15 = vadd.s32 18, %v3025_v12  ;;  %v589_v16 = vadd.s32 54, %v3025_v12  ;;  %v590_v17 = vadd.s32 90, %v3025_v12  ;;  %v591_v18 = vadd.s32 126, %v3025_v12  ;;  %s2676_s13 = smul.u32 12, %s3002_s14 }
  0x1a   : > { %s396_s29 = scalar_lea.vmem %s3490_s0, %s2120_s22  ;;  %v592_v19 = vadd.s32 162, %v3025_v12  ;;  %v593_v20 = vadd.s32 198, %v3025_v12  ;;  %v594_v22 = vadd.s32 234, %v3025_v12  ;;  %v595_v23 = vadd.s32 270, %v3025_v12  ;;  %s2874_s14 = smov 19  }
  0x1b   : > { %v404_v8 = vld [vmem:[%s396_s29] sm:$0xff]  ;;  %vm597_vm1 = vcmp.eq.s32.totalorder %v3022_v11, %v588_v15  ;;  %vm600_vm2 = vcmp.eq.s32.totalorder %v3022_v11, %v589_v16  ;;  %vm596_vm3 = vcmp.eq.s32.totalorder %v3010_v6, %v588_v15  ;;  %vm599_vm4 = vcmp.eq.s32.totalorder %v3010_v6, %v589_v16  ;;  %s401_s22 = scalar_lea.vmem %s3467_s1, %s2676_s13  ;;  %s3481_s29 = smov 110  }
  0x1c   : > { %2392 = vmatprep.subr.mxu0 %v404_v8  ;;  %vm2507_vm5 = vmpackc.low %vm600_vm2, %vm597_vm1  ;;  %vm598_vm6 = vcmp.eq.s32.totalorder %v3030_v14, %v588_v15  ;;  %vm601_vm7 = vcmp.eq.s32.totalorder %v3030_v14, %v589_v16  ;;  %vm603_vm8 = vcmp.eq.s32.totalorder %v3022_v11, %v590_v17  ;;  %vm606_vm9 = vcmp.eq.s32.totalorder %v3022_v11, %v591_v18  ;;  %v1411_v60 = vld [vmem:[%s401_s22] sm:$0xff]  ;;  %v1412_v0 = vld [vmem:[%s401_s22 + $0x8] sm:$0xf]  ;;  %s2880_s13 = smov 92  }
  0x1d   : > { %2393 = vmatpush3.msra.mxu0 %v404_v8  ;;  %2508 = vmatprep.subr.msk.bf16.mxu1 %vm2507_vm5, %v2871_v21  ;;  %vm2509_vm10 = vmpackc.low %vm599_vm4, %vm596_vm3  ;;  %vm602_vm11 = vcmp.eq.s32.totalorder %v3010_v6, %v590_v17  ;;  %vm605_vm12 = vcmp.eq.s32.totalorder %v3010_v6, %v591_v18  ;;  %vm604_vm14 = vcmp.eq.s32.totalorder %v3030_v14, %v590_v17  ;;  %v514_v39 = vadd.s32 270, %v3019_v10 }
  0x1e   : > { %2395 = vmatmul.mubr.msk.f32.vlgmr.msra.gmra.mrb[0].mxu0 %vm417_vm0, %v403_v9  ;;  %2523 = vmatprep.subr.bf16.mxu0 %v2870_v13  ;;  %vm2524_vm13 = vmpackc.low %vm601_vm7, %vm598_vm6  ;;  %vm607_vm15 = vcmp.eq.s32.totalorder %v3030_v14, %v591_v18  ;;  %vm609_vm1 = vcmp.eq.s32.totalorder %v3022_v11, %v592_v19  ;;  %vm612_vm2 = vcmp.eq.s32.totalorder %v3022_v11, %v593_v20  ;;  %v957_v40 = vadd.s32 36, %v3019_v10 }
  0x1f   : > { %2510 = vmatpush1.bf16.msk.msra.mxu1 %vm2509_vm10, %v2871_v21  ;;  %2525 = vmatpush3.bf16.msk.msra.mxu0 %vm2524_vm13, %v2871_v21  ;;  %vm2511_vm0 = vmpackc.low %vm606_vm9, %vm603_vm8  ;;  %vm608_vm4 = vcmp.eq.s32.totalorder %v3010_v6, %v592_v19  ;;  %vm611_vm5 = vcmp.eq.s32.totalorder %v3010_v6, %v593_v20  ;;  %vm610_vm7 = vcmp.eq.s32.totalorder %v3030_v14, %v592_v19  ;;  %v958_v41 = vadd.s32 72, %v3019_v10  ;;  %v1691_v19 = vld [vmem:[%s3472_s6] sm:$0xf] }
  0x20   : > { %2512 = vmatprep.subr.msk.bf16.mxu1 %vm2511_vm0, %v2871_v21  ;;  %2526 = vmatprep.subr.bf16.mxu0 %v2870_v13  ;;  %vm2513_vm3 = vmpackc.low %vm605_vm12, %vm602_vm11  ;;  %vm613_vm10 = vcmp.eq.s32.totalorder %v3030_v14, %v593_v20  ;;  %vm615_vm12 = vcmp.eq.s32.totalorder %v3022_v11, %v594_v22  ;;  %vm618_vm13 = vcmp.eq.s32.totalorder %v3022_v11, %v595_v23  ;;  %v959_v42 = vadd.s32 108, %v3019_v10  ;;  %v1700_v20 = vld [vmem:[%s3473_s7] sm:$0xf] }
  0x21   : > { %vm2527_vm6 = vmpackc.low %vm607_vm15, %vm604_vm14  ;;  %vm614_vm15 = vcmp.eq.s32.totalorder %v3010_v6, %v594_v22  ;;  %vm617_vm0 = vcmp.eq.s32.totalorder %v3010_v6, %v595_v23  ;;  %v960_v43 = vadd.s32 144, %v3019_v10  ;;  %v961_v44 = vadd.s32 180, %v3019_v10 }
  0x22   : > { %vm2515_vm8 = vmpackc.low %vm612_vm2, %vm609_vm1  ;;  %vm616_vm1 = vcmp.eq.s32.totalorder %v3030_v14, %v594_v22  ;;  %vm619_vm2 = vcmp.eq.s32.totalorder %v3030_v14, %v595_v23  ;;  %v962_v45 = vadd.s32 216, %v3019_v10  ;;  %v963_v46 = vadd.s32 252, %v3019_v10 }
  0x23   : > { %2514 = vmatpush1.bf16.msk.msra.mxu1 %vm2513_vm3, %v2871_v21  ;;  %2528 = vmatpush3.bf16.msk.msra.mxu0 %vm2527_vm6, %v2871_v21  ;;  %vm2517_vm9 = vmpackc.low %vm611_vm5, %vm608_vm4  ;;  %vm516_vm5 = vcmp.eq.s32.totalorder %v3022_v11, %v507_v24  ;;  %vm519_vm6 = vcmp.eq.s32.totalorder %v3022_v11, %v508_v25  ;;  %v964_v47 = vadd.s32 288, %v3019_v10  ;;  %v1184_v48 = vadd.s32 36, %v3025_v12 }
  0x24   : > { %2516 = vmatprep.subr.msk.bf16.mxu1 %vm2515_vm8, %v2871_v21  ;;  %2529 = vmatprep.subr.bf16.mxu0 %v2870_v13  ;;  %vm2530_vm11 = vmpackc.low %vm613_vm10, %vm610_vm7  ;;  %vm515_vm10 = vcmp.eq.s32.totalorder %v3010_v6, %v507_v24  ;;  %vm3479_vm8 = vmmov 0   ;;  %v1185_v49 = vadd.s32 72, %v3025_v12  ;;  %v1186_v50 = vadd.s32 108, %v3025_v12 }
  0x25   : > { %vm2519_vm14 = vmpackc.low %vm618_vm13, %vm615_vm12  ;;  %2413 = vmatprep.mubr.msk.f32.mxu0 %vm3479_vm8, %v2872_v26  ;;  %vm520_vm12 = vcmp.eq.s32.totalorder %v3030_v14, %v508_v25  ;;  %vm532_vm8 = vcmp.eq.s32.totalorder %v3030_v14, %v512_v36  ;;  %v1187_v51 = vadd.s32 144, %v3025_v12  ;;  %v1188_v53 = vadd.s32 180, %v3025_v12 }
  0x26   : > { %vm2521_vm3 = vmpackc.low %vm617_vm0, %vm614_vm15  ;;  %vm522_vm15 = vcmp.eq.s32.totalorder %v3022_v11, %v509_v29  ;;  %vm525_vm0 = vcmp.eq.s32.totalorder %v3022_v11, %v510_v30  ;;  %v1189_v54 = vadd.s32 216, %v3025_v12  ;;  %v1190_v57 = vadd.s32 252, %v3025_v12 }
  0x27   : > { %2518 = vmatpush1.bf16.msk.msra.mxu1 %vm2517_vm9, %v2871_v21  ;;  %2531 = vmatpush3.bf16.msk.msra.mxu0 %vm2530_vm11, %v2871_v21  ;;  %vm2533_vm4 = vmpackc.low %vm619_vm2, %vm616_vm1  ;;  %vm518_vm9 = vcmp.eq.s32.totalorder %v3010_v6, %v508_v25  ;;  %vm517_vm11 = vcmp.eq.s32.totalorder %v3030_v14, %v507_v24  ;;  %vm3478_vm1 = vcmask 523264   ;;  %vm521_vm2 = vcmp.eq.s32.totalorder %v3010_v6, %v509_v29 }
  0x28   : > { %2532 = vmatprep.subr.bf16.mxu0 %v2870_v13  ;;  %2520 = vmatprep.subr.msk.bf16.mxu1 %vm2519_vm14, %v2871_v21  ;;  %vm2535_vm7 = vmpackc.low %vm519_vm6, %vm516_vm5  ;;  %vm523_vm5 = vcmp.eq.s32.totalorder %v3030_v14, %v509_v29  ;;  %vm526_vm6 = vcmp.eq.s32.totalorder %v3030_v14, %v510_v30  ;;  %v1191_v58 = vadd.s32 288, %v3025_v12  ;;  %v1414_v63 = vcombine.high %v1411_v60, %v1411_v60 }
  0x29   : > { %vm3092_vm13 = vmpackc.low %vm518_vm9, %vm515_vm10  ;;  %vm531_vm10 = vcmp.eq.s32.totalorder %v3022_v11, %v512_v36 }
  0x2a   : > { %vm3096_vm14 = vmpackc.low %vm520_vm12, %vm517_vm11  ;;  %vm527_vm12 = vcmp.eq.s32.totalorder %v3010_v6, %v511_v35 }
  0x2b   : > { %2522 = vmatpush1.bf16.msk.msra.mxu1 %vm2521_vm3, %v2871_v21  ;;  %2534 = vmatpush3.bf16.msk.msra.mxu0 %vm2533_vm4, %v2871_v21  ;;  %vm524_vm3 = vcmp.eq.s32.totalorder %v3010_v6, %v510_v30  ;;  %vm2539_vm4 = vmpackc.low %vm525_vm0, %vm522_vm15  ;;  %vm530_vm15 = vcmp.eq.s32.totalorder %v3010_v6, %v512_v36 }
  0x2c   : > { %2551 = vmatprep.subr.bf16.mxu0 %v2870_v13  ;;  %2536 = vmatprep.subr.msk.bf16.mxu1 %vm2535_vm7, %v2871_v21  ;;  %vm528_vm7 = vcmp.eq.s32.totalorder %v3022_v11, %v511_v35  ;;  %vm2541_vm9 = vmpackc.low %vm524_vm3, %vm521_vm2  ;;  %vm537_vm2 = vcmp.eq.s32.totalorder %v3022_v11, %v514_v39 }
  0x2d   : > { %vm2555_vm11 = vmpackc.low %vm526_vm6, %vm523_vm5  ;;  %vm533_vm5 = vcmp.eq.s32.totalorder %v3010_v6, %v513_v38  ;;  %vm536_vm6 = vcmp.eq.s32.totalorder %v3010_v6, %v514_v39 }
  0x2e   : > { %vm2543_vm0 = vmpackc.low %vm531_vm10, %vm528_vm7  ;;  %vm535_vm10 = vcmp.eq.s32.totalorder %v3030_v14, %v513_v38 }
  0x2f   : > { %vm2545_vm3 = vmpackc.low %vm530_vm15, %vm527_vm12  ;;  %vm965_vm12 = vcmp.eq.s32.totalorder %v3010_v6, %v957_v40  ;;  %vm968_vm15 = vcmp.eq.s32.totalorder %v3010_v6, %v958_v41 }
  0x90   : > { %v410_v32 = vpop.permute.xlu0 %409 }
  0x94   : > { %v415_v52 = vpop.permute.xlu0 %414 }
  0xf1   : > { %v3102_v31 = vpop.f32.mrb[0].mxu0 }
  0xf2   : > { %v490_v33 = vpop.f32.mrb[1].mxu0  ;;  %v496_v56 = vadd.f32 %v3102_v31, %v415_v52 }
  0xf3   : > { %v3105_v34 = vadd.f32 %v490_v33, %v410_v32 }
  0xf4   : > { %v1264_v59 = vrot.slane %v496_v56, 4 }
  0xf5   : > { %v669_v37 = vrot.slane %v3105_v34, 4 }
  0xf7   : > { %2188 = vmatmul.mubr.msk.f32.vlgmr.msra.gmra.mrb[0].mxu1 %vm3478_vm1, %v669_v37  ;;  %2414 = vmatmul.mubr.msk.f32.vlgmr.msra.gmra.mrb[2].mxu0 %vm3478_vm1, %v669_v37  ;;  %vm529_vm1 = vcmp.eq.s32.totalorder %v3030_v14, %v511_v35 }
  0xf8   : > { %2538 = vmatpush1.bf16.msk.msra.mxu1 %vm3092_vm13, %v2871_v21  ;;  %2553 = vmatpush3.bf16.msk.msra.mxu0 %vm3096_vm14, %v2871_v21  ;;  %vm3495_vm13 = vmmov 0   ;;  %vm534_vm14 = vcmp.eq.s32.totalorder %v3022_v11, %v513_v38 }
  0xf9   : > { %2540 = vmatprep.subr.msk.bf16.mxu1 %vm2539_vm4, %v2871_v21  ;;  %2554 = vmatprep.subr.bf16.mxu0 %v2870_v13  ;;  %vm2558_vm4 = vmpackc.low %vm532_vm8, %vm529_vm1 }
  0xfa   : > { %880 = vmatprep.mubr.f32.mxu1 %v2872_v26  ;;  %2432 = vmatprep.mubr.msk.f32.mxu0 %vm3495_vm13, %v2872_v26  ;;  %vm2547_vm7 = vmpackc.low %vm537_vm2, %vm534_vm14  ;;  %vm538_vm13 = vcmp.eq.s32.totalorder %v3030_v14, %v514_v39  ;;  %vm967_vm14 = vcmp.eq.s32.totalorder %v3030_v14, %v957_v40  ;;  %vm970_vm2 = vcmp.eq.s32.totalorder %v3030_v14, %v958_v41 }
  0xfb   : > { %vm2549_vm8 = vmpackc.low %vm536_vm6, %vm533_vm5  ;;  %vm971_vm6 = vcmp.eq.s32.totalorder %v3010_v6, %v959_v42 }
  0xfc   : > { %2542 = vmatpush1.bf16.msk.msra.mxu1 %vm2541_vm9, %v2871_v21  ;;  %2556 = vmatpush3.bf16.msk.msra.mxu0 %vm2555_vm11, %v2871_v21  ;;  %vm966_vm9 = vcmp.eq.s32.totalorder %v3022_v11, %v957_v40  ;;  %vm969_vm11 = vcmp.eq.s32.totalorder %v3022_v11, %v958_v41  ;;  %vm2561_vm1 = vmpackc.low %vm538_vm13, %vm535_vm10 }
  0xfd   : > { %2544 = vmatprep.subr.msk.bf16.mxu1 %vm2543_vm0, %v2871_v21  ;;  %2557 = vmatprep.subr.bf16.mxu0 %v2870_v13  ;;  %vm2563_vm0 = vmpackc.low %vm969_vm11, %vm966_vm9  ;;  %vm973_vm9 = vcmp.eq.s32.totalorder %v3030_v14, %v959_v42  ;;  %vm976_vm11 = vcmp.eq.s32.totalorder %v3030_v14, %v960_v43 }
  0xfe   : > { %vm2565_vm13 = vmpackc.low %vm968_vm15, %vm965_vm12  ;;  %vm978_vm12 = vcmp.eq.s32.totalorder %v3022_v11, %v961_v44  ;;  %vm981_vm15 = vcmp.eq.s32.totalorder %v3022_v11, %v962_v45 }
  0xff   : > { %vm2580_vm5 = vmpackc.low %vm970_vm2, %vm967_vm14  ;;  %vm977_vm2 = vcmp.eq.s32.totalorder %v3010_v6, %v961_v44 }
 0x100   : > { %2546 = vmatpush1.bf16.msk.msra.mxu1 %vm2545_vm3, %v2871_v21  ;;  %2559 = vmatpush3.bf16.msk.msra.mxu0 %vm2558_vm4, %v2871_v21  ;;  %vm972_vm3 = vcmp.eq.s32.totalorder %v3022_v11, %v959_v42  ;;  %vm975_vm4 = vcmp.eq.s32.totalorder %v3022_v11, %v960_v43  ;;  %vm2583_vm14 = vmpackc.low %vm976_vm11, %vm973_vm9  ;;  %vm983_vm9 = vcmp.eq.s32.totalorder %v3010_v6, %v963_v46 }
 0x101   : > { %2548 = vmatprep.subr.msk.bf16.mxu1 %vm2547_vm7, %v2871_v21  ;;  %2560 = vmatprep.subr.bf16.mxu0 %v2870_v13  ;;  %vm974_vm7 = vcmp.eq.s32.totalorder %v3010_v6, %v960_v43  ;;  %vm2567_vm10 = vmpackc.low %vm975_vm4, %vm972_vm3  ;;  %vm980_vm3 = vcmp.eq.s32.totalorder %v3010_v6, %v962_v45  ;;  %vm986_vm11 = vcmp.eq.s32.totalorder %v3010_v6, %v964_v47 }
 0x102   : > { %vm2571_vm4 = vmpackc.low %vm981_vm15, %vm978_vm12  ;;  %vm985_vm15 = vcmp.eq.s32.totalorder %v3030_v14, %v963_v46 }
 0x104   : > { %2550 = vmatpush1.bf16.msk.msra.mxu1 %vm2549_vm8, %v2871_v21  ;;  %2562 = vmatpush3.bf16.msk.msra.mxu0 %vm2561_vm1, %v2871_v21  ;;  %vm3496_vm8 = vcmask 523264  }
 0x105   : > { %2564 = vmatprep.subr.msk.bf16.mxu1 %vm2563_vm0, %v2871_v21  ;;  %2579 = vmatprep.subr.bf16.mxu0 %v2870_v13  ;;  %vm3497_vm1 = vmmov %vm3496_vm8 }
 0x106   : > { %vm2569_vm0 = vmpackc.low %vm974_vm7, %vm971_vm6  ;;  %vm987_vm6 = vcmp.eq.s32.totalorder %v3022_v11, %v964_v47 }
 0x107   : > { %2214 = vmatmul.mubr.msk.f32.vlgmr.msra.gmra.mrb[0].mxu1 %vm3496_vm8, %v3105_v34  ;;  %2433 = vmatmul.mubr.msk.f32.vlgmr.msra.gmra.mrb[2].mxu0 %vm3497_vm1, %v3105_v34  ;;  %vm979_vm8 = vcmp.eq.s32.totalorder %v3030_v14, %v961_v44  ;;  %vm982_vm1 = vcmp.eq.s32.totalorder %v3030_v14, %v962_v45  ;;  %vm2573_vm7 = vmpackc.low %vm980_vm3, %vm977_vm2 }
 0x108   : > { %2566 = vmatpush1.bf16.msk.msra.mxu1 %vm2565_vm13, %v2871_v21  ;;  %2581 = vmatpush3.bf16.msk.msra.mxu0 %vm2580_vm5, %v2871_v21  ;;  %vm3498_vm13 = vmmov 0   ;;  %vm984_vm5 = vcmp.eq.s32.totalorder %v3022_v11, %v963_v46  ;;  %vm2577_vm2 = vmpackc.low %vm986_vm11, %vm983_vm9  ;;  %vm1198_vm11 = vcmp.eq.s32.totalorder %v3010_v6, %v1186_v50 }
 0x109   : > { %2568 = vmatprep.subr.msk.bf16.mxu1 %vm2567_vm10, %v2871_v21  ;;  %2582 = vmatprep.subr.bf16.mxu0 %v2870_v13  ;;  %vm2586_vm10 = vmpackc.low %vm982_vm1, %vm979_vm8  ;;  %vm1195_vm8 = vcmp.eq.s32.totalorder %v3010_v6, %v1185_v49 }
 0x10a   : > { %1104 = vmatprep.mubr.f32.mxu1 %v2872_v26  ;;  %2451 = vmatprep.mubr.msk.f32.mxu0 %vm3498_vm13, %v2872_v26  ;;  %vm2575_vm12 = vmpackc.low %vm987_vm6, %vm984_vm5  ;;  %vm988_vm13 = vcmp.eq.s32.totalorder %v3030_v14, %v964_v47  ;;  %vm1194_vm5 = vcmp.eq.s32.totalorder %v3030_v14, %v1184_v48  ;;  %vm1197_vm6 = vcmp.eq.s32.totalorder %v3030_v14, %v1185_v49 }
 0x10b   : > { %vm2589_vm3 = vmpackc.low %vm988_vm13, %vm985_vm15 }
 0x10c   : > { %2570 = vmatpush1.bf16.msk.msra.mxu1 %vm2569_vm0, %v2871_v21  ;;  %2584 = vmatpush3.bf16.msk.msra.mxu0 %vm2583_vm14, %v2871_v21  ;;  %vm1193_vm0 = vcmp.eq.s32.totalorder %v3022_v11, %v1184_v48  ;;  %vm1196_vm14 = vcmp.eq.s32.totalorder %v3022_v11, %v1185_v49  ;;  %vm2608_vm9 = vmpackc.low %vm1197_vm6, %vm1194_vm5  ;;  %vm1204_vm6 = vcmp.eq.s32.totalorder %v3010_v6, %v1188_v53 }
 0x10d   : > { %2572 = vmatprep.subr.msk.bf16.mxu1 %vm2571_vm4, %v2871_v21  ;;  %2585 = vmatprep.subr.bf16.mxu0 %v2870_v13  ;;  %vm1192_vm4 = vcmp.eq.s32.totalorder %v3010_v6, %v1184_v48  ;;  %vm2591_vm1 = vmpackc.low %vm1196_vm14, %vm1193_vm0  ;;  %vm1200_vm0 = vcmp.eq.s32.totalorder %v3030_v14, %v1186_v50  ;;  %vm1203_vm14 = vcmp.eq.s32.totalorder %v3030_v14, %v1187_v51 }
 0x10e   : > { %vm3221_vm13 = vmpackc.low %vm1195_vm8, %vm1192_vm4  ;;  %vm1205_vm4 = vcmp.eq.s32.totalorder %v3022_v11, %v1188_v53  ;;  %vm1208_vm8 = vcmp.eq.s32.totalorder %v3022_v11, %v1189_v54 }
 0x10f   : > { %vm2611_vm5 = vmpackc.low %vm1203_vm14, %vm1200_vm0  ;;  %vm1210_vm0 = vcmp.eq.s32.totalorder %v3010_v6, %v1190_v57  ;;  %vm1213_vm14 = vcmp.eq.s32.totalorder %v3010_v6, %v1191_v58 }
 0x110   : > { %2574 = vmatpush1.bf16.msk.msra.mxu1 %vm2573_vm7, %v2871_v21  ;;  %2587 = vmatpush3.bf16.msk.msra.mxu0 %vm2586_vm10, %v2871_v21  ;;  %vm1199_vm7 = vcmp.eq.s32.totalorder %v3022_v11, %v1186_v50  ;;  %vm1202_vm10 = vcmp.eq.s32.totalorder %v3022_v11, %v1187_v51 }
 0x111   : > { %2576 = vmatprep.subr.msk.bf16.mxu1 %vm2575_vm12, %v2871_v21  ;;  %2588 = vmatprep.subr.bf16.mxu0 %v2870_v13  ;;  %vm1201_vm12 = vcmp.eq.s32.totalorder %v3010_v6, %v1187_v51  ;;  %vm2595_vm15 = vmpackc.low %vm1202_vm10, %vm1199_vm7  ;;  %vm1207_vm7 = vcmp.eq.s32.totalorder %v3010_v6, %v1189_v54 }
 0x112   : > { %vm2599_vm10 = vmpackc.low %vm1208_vm8, %vm1205_vm4  ;;  %vm1212_vm8 = vcmp.eq.s32.totalorder %v3030_v14, %v1190_v57 }
 0x114   : > { %2578 = vmatpush1.bf16.msk.msra.mxu1 %vm2577_vm2, %v2871_v21  ;;  %2590 = vmatpush3.bf16.msk.msra.mxu0 %vm2589_vm3, %v2871_v21  ;;  %vm3501_vm2 = vcmask 523264  }
 0x115   : > { %2592 = vmatprep.subr.msk.bf16.mxu1 %vm2591_vm1, %v2871_v21  ;;  %2607 = vmatprep.subr.bf16.mxu0 %v2870_v13  ;;  %vm3502_vm3 = vmmov %vm3501_vm2 }
 0x116   : > { %vm2597_vm1 = vmpackc.low %vm1201_vm12, %vm1198_vm11  ;;  %vm1214_vm11 = vcmp.eq.s32.totalorder %v3022_v11, %v1191_v58 }
 0x117   : > { %2264 = vmatmul.mubr.msk.f32.vlgmr.msra.gmra.mrb[0].mxu1 %vm3501_vm2, %v496_v56  ;;  %2452 = vmatmul.mubr.msk.f32.vlgmr.msra.gmra.mrb[2].mxu0 %vm3502_vm3, %v496_v56  ;;  %vm1206_vm2 = vcmp.eq.s32.totalorder %v3030_v14, %v1188_v53  ;;  %vm1209_vm3 = vcmp.eq.s32.totalorder %v3030_v14, %v1189_v54  ;;  %vm2601_vm12 = vmpackc.low %vm1207_vm7, %vm1204_vm6  ;;  %vm3504_vm6 = vcmask 523264  }
 0x118   : > { %2594 = vmatpush1.bf16.msk.msra.mxu1 %vm3221_vm13, %v2871_v21  ;;  %2609 = vmatpush3.bf16.msk.msra.mxu0 %vm2608_vm9, %v2871_v21  ;;  %vm3503_vm13 = vmmov 0   ;;  %vm1211_vm9 = vcmp.eq.s32.totalorder %v3022_v11, %v1190_v57  ;;  %vm3505_vm7 = vmmov %vm3504_vm6 }
 0x119   : > { %2596 = vmatprep.subr.msk.bf16.mxu1 %vm2595_vm15, %v2871_v21  ;;  %2610 = vmatprep.subr.bf16.mxu0 %v2870_v13  ;;  %vm2614_vm15 = vmpackc.low %vm1209_vm3, %vm1206_vm2  ;;  %vm1425_vm2 = vcmask 1043456   ;;  %vm1438_vm3 = vcmask 154624  }
 0x11a   : > { %1331 = vmatprep.mubr.f32.mxu1 %v2872_v26  ;;  %2470 = vmatprep.mubr.msk.f32.mxu0 %vm3503_vm13, %v2872_v26  ;;  %vm2603_vm4 = vmpackc.low %vm1214_vm11, %vm1211_vm9  ;;  %vm1215_vm13 = vcmp.eq.s32.totalorder %v3030_v14, %v1191_v58  ;;  %vm1455_vm9 = vcmask 1039360  }
 0x11b   : > { %vm2324_vm11 = vmneg %vm1438_vm3 }
 0x11c   : > { %2598 = vmatpush1.bf16.msk.msra.mxu1 %vm2597_vm1, %v2871_v21  ;;  %2612 = vmatpush3.bf16.msk.msra.mxu0 %vm2611_vm5, %v2871_v21  ;;  %vm2605_vm1 = vmpackc.low %vm1213_vm14, %vm1210_vm0  ;;  %vm1479_vm0 = vcmask 900096   ;;  %vm1467_vm14 = vcmask 1031168  }
 0x11d   : > { %2600 = vmatprep.subr.msk.bf16.mxu1 %vm2599_vm10, %v2871_v21  ;;  %2613 = vmatprep.subr.bf16.mxu0 %v2870_v13  ;;  %vm2617_vm5 = vmpackc.low %vm1215_vm13, %vm1212_vm8  ;;  %vm3506_vm10 = vmmov 0   ;;  %vm1445_vm13 = vcmask 711680   ;;  %vm1503_vm8 = vcmask 883712  }
 0x120   : > { %2602 = vmatpush1.bf16.msk.msra.mxu1 %vm2601_vm12, %v2871_v21  ;;  %2615 = vmatpush3.bf16.msk.msra.mxu0 %vm2614_vm15, %v2871_v21  ;;  %vm2883_vm12 = vmmov 1  }
 0x121   : > { %2604 = vmatprep.subr.msk.bf16.mxu1 %vm2603_vm4, %v2871_v21  ;;  %2616 = vmatprep.subr.bf16.mxu0 %v2870_v13  ;;  %vm2638_vm15 = vmpackc.low %vm2883_vm12, %vm1445_vm13 }
 0x122   : > { %vm2622_vm4 = vmpackc.low %vm2883_vm12, %vm2324_vm11  ;;  %vm1546_vm11 = vcmask 588800  }
 0x124   : > { %2606 = vmatpush1.bf16.msk.msra.mxu1 %vm2605_vm1, %v2871_v21  ;;  %2618 = vmatpush3.bf16.msk.msra.mxu0 %vm2617_vm5, %v2871_v21  ;;  %vm1491_vm1 = vcmask 891904   ;;  %vm1527_vm5 = vcmask 744448  }
 0x125   : > { %2636 = vmatprep.subr.bf16.mxu0 %v2870_v13 }
 0x127   : > { %2314 = vmatmul.mubr.msk.f32.vlgmr.msra.gmra.mrb[0].mxu1 %vm3504_vm6, %v1264_v59  ;;  %2471 = vmatmul.mubr.msk.f32.vlgmr.msra.gmra.mrb[2].mxu0 %vm3505_vm7, %v1264_v59  ;;  %vm1515_vm6 = vcmask 752640   ;;  %vm1539_vm7 = vcmask 736256  }
 0x128   : > { %2491 = vmatprep.mubr.msk.f32.mxu0 %vm3506_vm10, %v2872_v26  ;;  %1614 = vmatprep.mubr.f32.mxu1 %v2872_v26 }
 0x1fa   : > { %v1333_v61 = vpop.f32.mrb[0].mxu1  ;;  %v1404_v62 = vpop.f32.mrb[2].mxu0 }
 0x1fb   : > { %v1419_v1 = vrot.slane %v1333_v61, 4  ;;  %v1421_v2 = vrot.slane %v1404_v62, 4  ;;  %v1335_v3 = vpop.f32.mrb[1].mxu1  ;;  %v2472_v5 = vpop.f32.mrb[3].mxu0 }
 0x1fc   : > { %v1420_v6 = vrot.slane %v1335_v3, 4 }
 0x1fd   : > { %v1426_v7 = vsel %vm1425_vm2, %v1411_v60, %v1419_v1  ;;  %v1428_v8 = vsel %vm1425_vm2, %v1412_v0, %v1421_v2 }
 0x1fe   : > { %1432 = vrot.lane.b32.xlu0 %v1426_v7, %s2874_s14  ;;  %v1427_v9 = vsel %vm1425_vm2, %v1414_v63, %v1420_v6 }
 0x1ff   : > { %1434 = vrot.lane.b32.xlu1 %v1427_v9, %s2874_s14 }
 0x203   : > { %1436 = vrot.lane.b32.xlu1 %v1428_v8, %s2874_s14 }
 0x270   : > { %v3283_v10 = vpop.permute.xlu0 %1432 }
 0x271   : > { %v1444_v11 = vsel %vm1438_vm3, 0.0, %v3283_v10  ;;  %v1435_v12 = vpop.permute.xlu1 %1434 }
 0x272   : > { %1449 = vrot.lane.b32.xlu0 %v1444_v11, %s3485_s24  ;;  %1461 = vrot.lane.b32.xlu1 %v1444_v11, %s2876_s25  ;;  %v1439_v17 = vsel %vm1438_vm3, %v3283_v10, %v1435_v12 }
 0x275   : > { %v1437_v14 = vpop.permute.xlu1 %1436 }
 0x276   : > { %v1440_v15 = vsel %vm1438_vm3, %v1435_v12, %v1437_v14  ;;  %1473 = vrot.lane.b32.xlu0 %v1444_v11, %s3481_s29  ;;  %1485 = vrot.lane.b32.xlu1 %v1444_v11, %s2878_s30 }
 0x277   : > { %v1446_v16 = vsel %vm1445_vm13, %v1440_v15, 0.0 }
 0x278   : > { %v2743_v18 = vpack.i.bf16 %v1446_v16, %v1439_v17 }
 0x27a   : > { %1497 = vrot.lane.b32.xlu0 %v1444_v11, %s3483_s12  ;;  %1509 = vrot.lane.b32.xlu1 %v1444_v11, %s2880_s13 }
 0x27e   : > { %2744 = vrot.lane.b32.xlu0 %v2743_v18, %s3481_s29  ;;  %2734 = vrot.lane.b32.xlu1 %v2743_v18, %s3485_s24  ;;  %s3508_s24 = smov 110   ;;  %s3509_s29 = smov 108  }
 0x282   : > { %2754 = vrot.lane.b32.xlu0 %v2743_v18, %s3483_s12  ;;  %2739 = vrot.lane.b32.xlu1 %v2743_v18, %s2876_s25 }
 0x286   : > { %2764 = vrot.lane.b32.xlu0 %v2743_v18, %s2881_s15  ;;  %2749 = vrot.lane.b32.xlu1 %v2743_v18, %s2878_s30 }
 0x28a   : > { %1521 = vrot.lane.b32.xlu0 %v1444_v11, %s2881_s15  ;;  %2759 = vrot.lane.b32.xlu1 %v2743_v18, %s2880_s13 }
 0x28e   : > { %1537 = vrot.lane.b32.xlu0 %v1446_v16, %s2882_s16  ;;  %1535 = vrot.lane.b32.xlu1 %v1439_v17, %s2882_s16 }
 0x292   : > { %1694 = vperm.xlu0 %2732, %v1691_v19   ;;  %1533 = vrot.lane.b32.xlu1 %v1444_v11, %s2882_s16 }
 0x296   : > { %1703 = vperm.xlu1 %2768, %v1700_v20  }
 0x2e4   : > { %v1450_v21 = vpop.permute.xlu0 %1449  ;;  %v1462_v22 = vpop.permute.xlu1 %1461 }
 0x2e8   : > { %v1474_v23 = vpop.permute.xlu0 %1473  ;;  %v1486_v24 = vpop.permute.xlu1 %1485 }
 0x2ec   : > { %v1498_v25 = vpop.permute.xlu0 %1497  ;;  %v3314_v27 = vpop.permute.xlu1 %1509 }
 0x2f0   : > { %v2745_v28 = vpop.permute.xlu0 %2744  ;;  %v2735_v29 = vpop.permute.xlu1 %2734 }
 0x2f1   : > { %v2737_v30 = vunpack.i.h.bf16 %v2735_v29  ;;  %v2736_v31 = vunpack.i.l.bf16 %v2735_v29  ;;  %v2747_v32 = vunpack.i.h.bf16 %v2745_v28  ;;  %v2746_v33 = vunpack.i.l.bf16 %v2745_v28 }
 0x2f2   : > { %v1720_v29 = vsub.s32 1, %v3004_v4 }
 0x2f3   : > { %v2637_v34 = vpack.c.bf16 %v2737_v30, %v1440_v15  ;;  %v1456_v35 = vsel %vm1455_vm9, %v1450_v21, %v2736_v31  ;;  %v1457_v36 = vsel %vm1455_vm9, %v2736_v31, %v2737_v30  ;;  %v1480_v43 = vsel %vm1479_vm0, %v1474_v23, %v2746_v33 }
 0x2f4   : > { %v2621_v37 = vpack.c.bf16 %v1456_v35, %v3283_v10  ;;  %v2755_v38 = vpop.permute.xlu0 %2754  ;;  %v2740_v39 = vpop.permute.xlu1 %2739  ;;  %v2619_v40 = vpack.c.bf16 %v1457_v36, %v1439_v17  ;;  %v1481_v45 = vsel %vm1479_vm0, %v2746_v33, %v2747_v32  ;;  %v1545_v17 = vld [vmem:[%s3471_s5] sm:$0xf]  ;;  %v1724_v21 = vsub.s32 2, %v3004_v4 }
 0x2f5   : > { %v2742_v41 = vunpack.i.h.bf16 %v2740_v39  ;;  %v2741_v42 = vunpack.i.l.bf16 %v2740_v39  ;;  %2639 = vmatpush3.bf16.msk.msra.mxu0 %vm2638_vm15, %v2637_v34  ;;  %v2756_v44 = vunpack.i.l.bf16 %v2755_v38  ;;  %v2757_v46 = vunpack.i.h.bf16 %v2755_v38 }
 0x2f6   : > { %2620 = vmatprep.subr.bf16.mxu1 %v2619_v40  ;;  %2640 = vmatprep.subr.bf16.mxu0 %v2870_v13  ;;  %v1716_v39 = vsub.s32 0, %v3004_v4 }
 0x2f7   : > { %v2641_v47 = vpack.c.bf16 %v2747_v32, %v2742_v41  ;;  %v1468_v48 = vsel %vm1467_vm14, %v1462_v22, %v2741_v42  ;;  %2623 = vmatpush1.bf16.msk.msra.mxu1 %vm2622_vm4, %v2621_v37  ;;  %v1469_v49 = vsel %vm1467_vm14, %v2741_v42, %v2742_v41  ;;  %v1504_v56 = vsel %vm1503_vm8, %v1498_v25, %v2756_v44 }
 0x2f8   : > { %v2626_v50 = vpack.c.bf16 %v1480_v43, %v1468_v48  ;;  %v2765_v51 = vpop.permute.xlu0 %2764  ;;  %v2750_v52 = vpop.permute.xlu1 %2749  ;;  %v2624_v53 = vpack.c.bf16 %v1481_v45, %v1469_v49  ;;  %v1505_v62 = vsel %vm1503_vm8, %v2756_v44, %v2757_v46 }
 0x2f9   : > { %v2752_v54 = vunpack.i.h.bf16 %v2750_v52  ;;  %v2751_v55 = vunpack.i.l.bf16 %v2750_v52  ;;  %2642 = vmatpush3.bf16.msra.mxu0 %v2641_v47  ;;  %v2767_v57 = vunpack.i.h.bf16 %v2765_v51  ;;  %v2766_v58 = vunpack.i.l.bf16 %v2765_v51 }
 0x2fa   : > { %2625 = vmatprep.subr.bf16.mxu1 %v2624_v53  ;;  %2643 = vmatprep.subr.bf16.mxu0 %v2870_v13 }
 0x2fb   : > { %v2644_v59 = vpack.c.bf16 %v2757_v46, %v2752_v54  ;;  %v1492_v60 = vsel %vm1491_vm1, %v1486_v24, %v2751_v55  ;;  %2627 = vmatpush1.bf16.msra.mxu1 %v2626_v50  ;;  %v1493_v61 = vsel %vm1491_vm1, %v2751_v55, %v2752_v54  ;;  %v1529_v6 = vsel %vm1527_vm5, %v2766_v58, %v2767_v57  ;;  %v1712_v24 = vld [vmem:[%s3468_s2] sm:$0x7] }
 0x2fc   : > { %v2630_v63 = vpack.c.bf16 %v1504_v56, %v1492_v60  ;;  %v1522_v0 = vpop.permute.xlu0 %1521  ;;  %v2760_v1 = vpop.permute.xlu1 %2759  ;;  %v2628_v2 = vpack.c.bf16 %v1505_v62, %v1493_v61  ;;  %v1725_v33 = vrot.slane %v1712_v24, %v1724_v21  ;;  %v1721_v38 = vrot.slane %v1712_v24, %v1720_v29 }
 0x2fd   : > { %v2762_v3 = vunpack.i.h.bf16 %v2760_v1  ;;  %v2761_v5 = vunpack.i.l.bf16 %v2760_v1  ;;  %2645 = vmatpush3.bf16.msra.mxu0 %v2644_v59  ;;  %v1528_v7 = vsel %vm1527_vm5, %v1522_v0, %v2766_v58  ;;  %v1717_v44 = vrot.slane %v1712_v24, %v1716_v39  ;;  %v2011_v58 = vld [vmem:[%s3476_s10] sm:$0xf] }
 0x2fe   : > { %2629 = vmatprep.subr.bf16.mxu1 %v2628_v2  ;;  %2646 = vmatprep.subr.bf16.mxu0 %v2870_v13 }
 0x2ff   : > { %v2647_v8 = vpack.c.bf16 %v2767_v57, %v2762_v3  ;;  %v1516_v9 = vsel %vm1515_vm6, %v3314_v27, %v2761_v5  ;;  %2631 = vmatpush1.bf16.msra.mxu1 %v2630_v63  ;;  %v1517_v10 = vsel %vm1515_vm6, %v2761_v5, %v2762_v3  ;;  %v2002_v57 = vld [vmem:[%s3475_s9] sm:$0xf] }
 0x300   : > { %v2634_v11 = vpack.c.bf16 %v1528_v7, %v1516_v9  ;;  %v1538_v12 = vpop.permute.xlu0 %1537  ;;  %v1536_v14 = vpop.permute.xlu1 %1535  ;;  %v2632_v15 = vpack.c.bf16 %v1529_v6, %v1517_v10 }
 0x301   : > { %2648 = vmatpush3.bf16.msra.mxu0 %v2647_v8  ;;  %v1541_v16 = vsel %vm1539_vm7, %v1536_v14, %v1538_v12 }
 0x302   : > { %2633 = vmatprep.subr.bf16.mxu1 %v2632_v15  ;;  %2489 = vmatprep.subr.mxu0 %v2872_v26 }
 0x303   : > { %2635 = vmatpush1.bf16.msra.mxu1 %v2634_v11 }
 0x304   : > { %v1534_v18 = vpop.permute.xlu1 %1533  ;;  %1566 = vmatprep.subr.mxu1 %v1541_v16 }
 0x305   : > { %v1540_v19 = vsel %vm1539_vm7, %v1534_v18, %v1536_v14  ;;  %2490 = vmatpush3.msra.mxu0 %v1538_v12 }
 0x306   : > { %2492 = vmatmul.mubr.msk.f32.vlgmr.msra.gmra.mrb[4].mxu0 %vm1546_vm11, %v1545_v17  ;;  %2657 = vmatprep.subr.bf16.mxu0 %v2870_v13 }
 0x307   : > { %1567 = vmatpush1.msra.mxu1 %v1540_v19  ;;  %2504 = vmatprep.mubr.msk.f32.mxu0 %vm3506_vm10, %v2872_v26  ;;  %vm1851_vm10 = vcmask 293888  }
 0x308   : > { %2326 = vmatmul.mubr.msk.f32.vlgmr.msra.gmra.mrb[2].mxu1 %vm1546_vm11, %v1545_v17 }
 0x309   : > { %1925 = vmatprep.mubr.f32.mxu1 %v2872_v26 }
 0x311   : > { %v1695_v20 = vpop.permute.xlu0 %1694 }
 0x315   : > { %v1704_v23 = vpop.permute.xlu1 %1703 }
 0x3d9   : > { %v1687_v22 = vpop.f32.mrb[4].mxu0 }
 0x3da   : > { %v1699_v25 = vmul.f32 %v1695_v20, %v1687_v22  ;;  %v2493_v27 = vpop.f32.mrb[5].mxu0 }
 0x3db   : > { %v1616_v28 = vpop.f32.mrb[2].mxu1 }
 0x3dc   : > { %v1708_v30 = vadd.f32 %v1704_v23, %v1699_v25  ;;  %v1697_v31 = vmul.f32 %v1695_v20, %v1616_v28  ;;  %v1618_v32 = vpop.f32.mrb[3].mxu1 }
 0x3dd   : > { %v1698_v34 = vmul.f32 %v1695_v20, %v1618_v32 }
 0x3de   : > { %v1711_v35 = vmax.f32 %v1708_v30, 0.0  ;;  %v1706_v36 = vadd.f32 %v1704_v23, %v1697_v31 }
 0x3df   : > { %v1707_v37 = vadd.f32 %v1704_v23, %v1698_v34 }
 0x3e0   : > { %v1731_v40 = vmul.f32 %v1725_v33, %v1711_v35  ;;  %v1709_v42 = vmax.f32 %v1706_v36, 0.0 }
 0x3e1   : > { %v1710_v41 = vmax.f32 %v1707_v37, 0.0 }
 0x3e2   : > { %1739 = vrot.lane.b32.xlu1 %v1731_v40, %s2874_s14  ;;  %v1729_v45 = vmul.f32 %v1717_v44, %v1709_v42 }
 0x3e3   : > { %v1730_v43 = vmul.f32 %v1721_v38, %v1710_v41 }
 0x3e5   : > { %1737 = vrot.lane.b32.xlu0 %v1730_v43, %s2874_s14 }
 0x3e9   : > { %1735 = vrot.lane.b32.xlu0 %v1729_v45, %s2874_s14  ;;  %s3507_s14 = smov 127  }
 0x454   : > { %v1740_v47 = vpop.permute.xlu1 %1739 }
 0x457   : > { %v1738_v46 = vpop.permute.xlu0 %1737 }
 0x458   : > { %v1742_v48 = vsel %vm1438_vm3, %v1738_v46, %v1740_v47 }
 0x459   : > { %v1747_v50 = vsel %vm1445_vm13, %v1742_v48, 0.0 }
 0x45a   : > { %v1752_v55 = vrot.slane %v1747_v50, 4 }
 0x45b   : > { %v1736_v49 = vpop.permute.xlu0 %1735 }
 0x45c   : > { %v1741_v4 = vsel %vm1438_vm3, %v1736_v49, %v1738_v46  ;;  %v1746_v51 = vsel %vm1438_vm3, 0.0, %v1736_v49  ;;  %vm2028_vm3 = vcmask 551936  }
 0x45d   : > { %1764 = vrot.lane.b32.xlu1 %v1746_v51, %s2876_s25  ;;  %v2769_v52 = vpack.i.bf16 %v1747_v50, %v1741_v4  ;;  %v1750_v53 = vrot.slane %v1746_v51, 4  ;;  %v1751_v54 = vrot.slane %v1741_v4, 4 }
 0x45f   : > { %2770 = vrot.lane.b32.xlu0 %v2769_v52, %s2876_s25  ;;  %v2784_v56 = vpack.i.bf16 %v1752_v55, %v1751_v54 }
 0x461   : > { %1786 = vrot.lane.b32.xlu1 %v1746_v51, %s2878_s30 }
 0x463   : > { %1753 = vrot.lane.b32.xlu0 %v1750_v53, %s3507_s14 }
 0x465   : > { %2775 = vrot.lane.b32.xlu1 %v2769_v52, %s2878_s30 }
 0x467   : > { %1775 = vrot.lane.b32.xlu0 %v1750_v53, %s3508_s24 }
 0x469   : > { %2780 = vrot.lane.b32.xlu1 %v2769_v52, %s2880_s13 }
 0x46b   : > { %1797 = vrot.lane.b32.xlu0 %v1750_v53, %s3509_s29 }
 0x46d   : > { %2785 = vrot.lane.b32.xlu1 %v2784_v56, %s3507_s14 }
 0x46f   : > { %2795 = vrot.lane.b32.xlu0 %v2784_v56, %s3509_s29 }
 0x471   : > { %2790 = vrot.lane.b32.xlu1 %v2784_v56, %s3508_s24  ;;  %s2677_s24 = smul.u32 192, %s2966_s21  ;;  %s2884_s21 = smov [#allocation2]  }
 0x473   : > { %2800 = vrot.lane.b32.xlu0 %v2784_v56, %s2881_s15  ;;  %s3424_s22 = scalar_lea.hbm %s3477_s11, %s2677_s24 }
 0x475   : > { %1808 = vrot.lane.b32.xlu1 %v1746_v51, %s2880_s13 }
 0x477   : > { %1819 = vrot.lane.b32.xlu0 %v1750_v53, %s2881_s15 }
 0x479   : > { %1832 = vrot.lane.b32.xlu1 %v1741_v4, %s2882_s16 }
 0x47b   : > { %1834 = vrot.lane.b32.xlu0 %v1747_v50, %s2882_s16 }
 0x47d   : > { %1830 = vrot.lane.b32.xlu1 %v1746_v51, %s2882_s16  ;;  %s390_s16 = sand.u32 1, %s2859_s18  }
 0x47e   : > { %s2675_s14 = smul.u32 12, %s390_s16  ;;  %s2031_s13 = scalar_lea.sflag [#allocation3], %s390_s16 }
 0x47f   : > { %2005 = vperm.xlu0 %2732, %v2002_v57  }
 0x480   : > { %s392_s29 = scalar_lea.vmem [#allocation2], %s2675_s14  ;;  %s2809_s14 = sshll.u32 %s2884_s21, 4  ;;  %s2810_s14 = int_to_ptr.vmem [resolvable:$false] %s2809_s14 }
 0x481   : > { %2014 = vperm.xlu1 %2768, %v2011_v58   ;;  %s2045_s25 = sshll.u32 %s392_s29, 4  ;;  %s2811_s0 = scalar_lea.vmem %s2810_s14, 384  ;;  %s3426_s25 = int_to_ptr.vmem [resolvable:$true] %s2045_s25 }
 0x482   : > { %s2805_s15 = scalar_lea.vmem %s3426_s25, 192  ;;  %p2812_p0 = scmp.lt.s32.totalorder %s3426_s25, %s2810_s14 }
 0x483   : > { %p2806_p11 = scmp.ne.s32.totalorder %s3426_s25, %s2805_s15  ;;  %p2813_p1 = scmp.lt.s32.totalorder %s2811_s0, %s2805_s15 }
 0x485   : > { %p2807_p12 = pnand %p2806_p11, %p2983_p5  ;;  %p2814_p2 = por %p2813_p1, %p2812_p0 }
 0x487   : > { %p2808_p13 = pneg %p2807_p12 }
 0x489   : > { %p2815_p3 = pnand %p2814_p2, %p2808_p13 }
 0x4cf   : > { %v1765_v59 = vpop.permute.xlu1 %1764 }
 0x4d1   : > { %v2771_v60 = vpop.permute.xlu0 %2770 }
 0x4d2   : > { %v2773_v3 = vunpack.i.h.bf16 %v2771_v60  ;;  %v2772_v5 = vunpack.i.l.bf16 %v2771_v60 }
 0x4d3   : > { %v1787_v61 = vpop.permute.xlu1 %1786 }
 0x4d4   : > { %v1770_v17 = vsel %vm1467_vm14, %v1765_v59, %v2772_v5  ;;  %v1771_v18 = vsel %vm1467_vm14, %v2772_v5, %v2773_v3 }
 0x4d5   : > { %v1754_v62 = vpop.permute.xlu0 %1753 }
 0x4d7   : > { %v2776_v63 = vpop.permute.xlu1 %2775 }
 0x4d8   : > { %v2778_v7 = vunpack.i.h.bf16 %v2776_v63  ;;  %v2777_v8 = vunpack.i.l.bf16 %v2776_v63 }
 0x4d9   : > { %v1776_v0 = vpop.permute.xlu0 %1775 }
 0x4da   : > { %v1792_v22 = vsel %vm1491_vm1, %v1787_v61, %v2777_v8  ;;  %v1793_v23 = vsel %vm1491_vm1, %v2777_v8, %v2778_v7 }
 0x4db   : > { %v2781_v1 = vpop.permute.xlu1 %2780 }
 0x4dc   : > { %v2783_v11 = vunpack.i.h.bf16 %v2781_v1  ;;  %v2782_v12 = vunpack.i.l.bf16 %v2781_v1 }
 0x4dd   : > { %v1798_v2 = vpop.permute.xlu0 %1797 }
 0x4de   : > { %v1815_v27 = vsel %vm1515_vm6, %v2782_v12, %v2783_v11 }
 0x4df   : > { %v2786_v6 = vpop.permute.xlu1 %2785 }
 0x4e0   : > { %v2788_v9 = vunpack.i.h.bf16 %v2786_v6  ;;  %v2787_v10 = vunpack.i.l.bf16 %v2786_v6 }
 0x4e1   : > { %v2796_v14 = vpop.permute.xlu0 %2795 }
 0x4e2   : > { %v1759_v15 = vsel %vm1455_vm9, %v1754_v62, %v2787_v10  ;;  %v1760_v16 = vsel %vm1455_vm9, %v2787_v10, %v2788_v9  ;;  %v2798_v19 = vunpack.i.h.bf16 %v2796_v14  ;;  %v2797_v20 = vunpack.i.l.bf16 %v2796_v14 }
 0x4e3   : > { %v2791_v21 = vpop.permute.xlu1 %2790  ;;  %v1840_v28 = vsel %vm1425_vm2, %v1747_v50, %v2788_v9  ;;  %v1839_v30 = vsel %vm1425_vm2, %v1741_v4, %v1760_v16  ;;  %v1838_v31 = vsel %vm1425_vm2, %v1746_v51, %v1759_v15 }
 0x4e4   : > { %v2793_v24 = vunpack.i.h.bf16 %v2791_v21  ;;  %v2792_v25 = vunpack.i.l.bf16 %v2791_v21  ;;  %v1804_v36 = vsel %vm1503_vm8, %v2797_v20, %v2798_v19  ;;  %v1803_v41 = vsel %vm1503_vm8, %v1798_v2, %v2797_v20 }
 0x4e5   : > { %v2801_v29 = vpop.permute.xlu0 %2800  ;;  %v1846_v45 = vsel %vm1425_vm2, %v2778_v7, %v2798_v19  ;;  %v1845_v4 = vsel %vm1425_vm2, %v1793_v23, %v1804_v36  ;;  %v1844_v53 = vsel %vm1425_vm2, %v1792_v22, %v1803_v41 }
 0x4e6   : > { %v1843_v32 = vsel %vm1425_vm2, %v2773_v3, %v2793_v24  ;;  %v1781_v33 = vsel %vm1479_vm0, %v1776_v0, %v2792_v25  ;;  %v1782_v34 = vsel %vm1479_vm0, %v2792_v25, %v2793_v24  ;;  %v2803_v35 = vunpack.i.h.bf16 %v2801_v29 }
 0x4e7   : > { %v2658_v37 = vpack.c.bf16 %v1843_v32, %v1840_v28  ;;  %v2802_v38 = vunpack.i.l.bf16 %v2801_v29  ;;  %v1809_v39 = vpop.permute.xlu1 %1808  ;;  %v1842_v40 = vsel %vm1425_vm2, %v1771_v18, %v1782_v34  ;;  %v1841_v44 = vsel %vm1425_vm2, %v1770_v17, %v1781_v33 }
 0x4e8   : > { %v1849_v42 = vsel %vm1425_vm2, %v2783_v11, %v2803_v35  ;;  %v2649_v43 = vpack.c.bf16 %v1842_v40, %v1839_v30  ;;  %v1814_v47 = vsel %vm1515_vm6, %v1809_v39, %v2782_v12  ;;  %v2651_v49 = vpack.c.bf16 %v1841_v44, %v1838_v31 }
 0x4e9   : > { %v1826_v46 = vsel %vm1527_vm5, %v2802_v38, %v2803_v35  ;;  %v1820_v48 = vpop.permute.xlu0 %1819  ;;  %2659 = vmatpush3.bf16.msra.mxu0 %v2658_v37  ;;  %v2661_v52 = vpack.c.bf16 %v1849_v42, %v1846_v45 }
 0x4ea   : > { %v1825_v50 = vsel %vm1527_vm5, %v1820_v48, %v2802_v38  ;;  %2650 = vmatprep.subr.bf16.mxu1 %v2649_v43  ;;  %v1848_v51 = vsel %vm1425_vm2, %v1815_v27, %v1826_v46  ;;  %2660 = vmatprep.subr.bf16.mxu0 %v2870_v13  ;;  %v1850_v13 = vld [vmem:[%s3474_s8] sm:$0xf] }
 0x4eb   : > { %v1847_v54 = vsel %vm1425_vm2, %v1814_v47, %v1825_v50  ;;  %v1833_v55 = vpop.permute.xlu1 %1832  ;;  %2652 = vmatpush1.bf16.msra.mxu1 %v2651_v49  ;;  %v2653_v56 = vpack.c.bf16 %v1848_v51, %v1845_v4 }
 0x4ec   : > { %v2655_v57 = vpack.c.bf16 %v1847_v54, %v1844_v53 }
 0x4ed   : > { %2654 = vmatprep.subr.bf16.mxu1 %v2653_v56  ;;  %v1835_v58 = vpop.permute.xlu0 %1834  ;;  %2662 = vmatpush3.bf16.msra.mxu0 %v2661_v52 }
 0x4ee   : > { %v1837_v59 = vsel %vm1539_vm7, %v1833_v55, %v1835_v58  ;;  %2502 = vmatprep.subr.mxu0 %v2872_v26 }
 0x4ef   : > { %v1831_v60 = vpop.permute.xlu1 %1830  ;;  %2656 = vmatpush1.bf16.msra.mxu1 %v2655_v57 }
 0x4f0   : > { %2329 = vmatprep.subr.msk.mxu1 %vm1425_vm2, %v1837_v59  ;;  %v1836_v61 = vsel %vm1539_vm7, %v1831_v60, %v1833_v55 }
 0x4f1   : > { %2503 = vmatpush3.msk.msra.mxu0 %vm1425_vm2, %v1835_v58 }
 0x4f2   : > { %2505 = vmatmul.mubr.msk.f32.vlgmr.msra.gmra.mrb[6].mxu0 %vm1851_vm10, %v1850_v13 }
 0x4f3   : > { %2330 = vmatpush1.msk.msra.mxu1 %vm1425_vm2, %v1836_v61 }
 0x4f4   : > { %2331 = vmatmul.mubr.msk.f32.vlgmr.msra.gmra.mrb[4].mxu1 %vm1851_vm10, %v1850_v13 }
 0x4fe   : > { %v2006_v26 = vpop.permute.xlu0 %2005 }
 0x500   : > { %v2015_v1 = vpop.permute.xlu1 %2014 }
 0x5c5   : > { %v1998_v62 = vpop.f32.mrb[6].mxu0 }
 0x5c6   : > { %v2010_v63 = vmul.f32 %v2006_v26, %v1998_v62  ;;  %v2506_v0 = vpop.f32.mrb[7].mxu0 }
 0x5c7   : > { %v1927_v2 = vpop.f32.mrb[4].mxu1 }
 0x5c8   : > { %v2019_v3 = vadd.f32 %v2015_v1, %v2010_v63  ;;  %v2008_v5 = vmul.f32 %v2006_v26, %v1927_v2  ;;  %v1929_v6 = vpop.f32.mrb[5].mxu1 }
 0x5c9   : > { %v2009_v7 = vmul.f32 %v2006_v26, %v1929_v6 }
 0x5ca   : > { %v2022_v8 = vmax.f32 %v2019_v3, 0.0  ;;  %v2017_v9 = vadd.f32 %v2015_v1, %v2008_v5 }
 0x5cb   : > { %v2018_v10 = vadd.f32 %v2015_v1, %v2009_v7 }
 0x5cc   : > { %v2020_v11 = vmax.f32 %v2017_v9, 0.0  ;;  %2029 = vst.msk [vmem:[%s392_s29 + $0x8] sm:$0xf] %vm2028_vm3, %v2022_v8 }
 0x5cd   : > { %v2021_v12 = vmax.f32 %v2018_v10, 0.0 }
 0x5cf   : > { %v2025_v14 = vcombine.low %v2020_v11, %v2021_v12 }
 0x5d1   : > { %2027 = vst [vmem:[%s392_s29] sm:$0xff] %v2025_v14 }
 0x5d2   : > { %2818 = shalt.err (!%p2815_p3)
}
 0x5d3   : > { %s2819_s16 = scalar_lea.hbm %s3424_s22, 192  ;;  %s2823_s30 = scalar_lea.hbm %s3477_s11, 384 }
 0x5d4   : > { %p2820_p4 = scmp.ne.s32.totalorder %s3424_s22, %s2819_s16  ;;  %p2824_p9 = scmp.lt.u32.totalorder %s3424_s22, %s3477_s11 }
 0x5d5   : > { %p2825_p10 = scmp.lt.u32.totalorder %s2823_s30, %s2819_s16  ;;  %p2827_p12 = scmp.lt.u32.totalorder %s2819_s16, %s3424_s22 }
 0x5d6   : > { %p2821_p7 = pnand %p2820_p4, %p2983_p5 }
 0x5d7   : > { %p2826_p11 = por %p2825_p10, %p2824_p9 }
 0x5d8   : > { %p2822_p8 = pneg %p2821_p7 }
 0x5d9   : > { %p2828_p13 = por %p2827_p12, %p2826_p11 }
 0x5db   : > { %p2829_p0 = pnand %p2828_p13, %p2822_p8 }
 0x5dd   : > { %2832 = shalt.err (!%p2829_p0)
}
 0x5de   : > { %2678 = dma.vmem_to_hbm [thread:$0]  (%p2983_p5), %s3426_s25, 192, %s3424_s22, %s2031_s13  }
 0x5df PF: > { %p2684_p1 = scmp.ge.s32.totalorder %s2867_s20, 2  ;;  %s2057_s0 = sand.u32 1, %s2855_s17  }
 0x5e0   : > { %s2058_s15 = scalar_lea.sflag [#allocation3], %s2057_s0 }
 0x5e1   : > { %p2681_p2 = pnand %p2684_p1, %p2987_p6 }
 0x5e3   : > { %2850 = dma.done.wait (!%p2681_p2), %s2058_s15, 192  }
 0x5e4   : > { %2852 = vsyncadd (!%p2681_p2), %s2058_s15, 4294967104  ;;  %p21_p3 = scmp.ge.s32.totalorder %s2970_s23, 4   ;;  %s3510_s17 = smov %s2859_s18 }
 0x5e5   : > { %s3511_s18 = smov %s2863_s19  ;;  %s3512_s19 = smov %s2981_s26 }
 0x5e6   : > { %s3513_s20 = smov %s2970_s23  ;;  %23 = sbr.rel (!%p21_p3) target bundleno = 5 (0x5), region = 102 }
 0x5ed   :  { %2063 = vsyncpa [#allocation3], 1 }
 0x5ee   :  { %2065 = vsyncpa [#allocation3 + $0x1], 1 }

</bundles_post_ra>
